<compile_context>
chip_gen: v7x
topology: tpu7x:2x2x1
jax: 0.10.0
libtpu: 0.0.40
codegen_flags: <defaults>
</compile_context>

<pallas_src>
import math
import jax
import jax.numpy as jnp
from jax.experimental import pallas as pl
from jax.experimental.pallas import tpu as pltpu

# ----- module hyper-parameters (args) -----
N_FEATURES = 2          # args.n_features
N_HANDCRAFTED = 1       # args.n_handcrafted_features
USE_HANDCRAFT = 1       # args.use_handcraft
N_HIDDEN = 16           # args.n_hidden
N_RNN_LAYERS = 1        # args.n_rnn_layers
DIRECTIONS = 1          # args.rnn_directions (bidirectional=False)
N_ACTION = 1            # args.n_action
BATCH = 2
SEQ = 8

FE_V = N_HIDDEN * N_RNN_LAYERS * DIRECTIONS + N_HANDCRAFTED * USE_HANDCRAFT   # 17
LH_V = FE_V * 2                                                               # 34
FE_G = N_HIDDEN * N_RNN_LAYERS * DIRECTIONS                                   # 16
LH_G = FE_G                                                                   # 16

HEAD_COLS = 4 * N_HIDDEN            # 64: fused head-entry width (== LSTM gate width)
G1_OFF = HEAD_COLS - LH_G           # 48: lane offset of the GlucoseModel fc1 block
SLAB_COLS = HEAD_COLS               # 64: widest packed parameter
OUT_COLS = 4                        # [value | cgm_mu | cgm_sigma | cgm]

assert LH_V <= G1_OFF               # value / glucose lane blocks must not overlap
assert N_HANDCRAFTED * USE_HANDCRAFT == 1 and N_ACTION == 1   # split-matmul trick


def _round8(n):
    return ((n + 7) // 8) * 8


# ----- parameter slab layout (each param starts at an 8-aligned row, col 0) -----
_PARAM_SHAPES = (
    ("wih",   (N_FEATURES, 4 * N_HIDDEN)),   # (2, 64)  LSTM input weights (transposed)
    ("whh",   (N_HIDDEN, 4 * N_HIDDEN)),     # (16, 64) LSTM recurrent weights (transposed)
    ("bls",   (1, 4 * N_HIDDEN)),            # (1, 64)  b_ih + b_hh
    ("whead", (FE_G, HEAD_COLS)),            # fused [W1a | 0 | Wg1a]
    ("w1b",   (1, HEAD_COLS)),               # feat weight row   (lanes 0:34, else 0)
    ("wg1b",  (1, HEAD_COLS)),               # action weight row (lanes 48:64, else 0)
    ("bhead", (1, HEAD_COLS)),               # [b1 | 0 | bg1]
    ("w2",    (LH_V, LH_V)),
    ("b2",    (1, LH_V)),
    ("w3",    (LH_V, LH_V)),
    ("b3",    (1, LH_V)),
    ("wv",    (LH_V, N_ACTION)),
    ("bv",    (1, N_ACTION)),
    ("wmsg",  (HEAD_COLS, 2)),               # rows 48:64 = [wmu | wsg]; other rows 0
    ("bmsg",  (1, 2)),                       # [bmu, bsg + 1e-5]
)


def _make_layout():
    offs, r = {}, 0
    for name, (rows, cols) in _PARAM_SHAPES:
        offs[name] = (r, rows, cols)
        r += _round8(rows)
    return offs, r


_P_OFF, _P_ROWS = _make_layout()             # 288 rows -> (288, 64) f32 slab (~72 KiB)


# =============================== kernel ====================================
def critic_kernel(s_ref, feat_ref, act_ref, z_ref, p_ref, out_ref):
    f32 = jnp.float32
    H = N_HIDDEN
    T = SEQ
    F = N_FEATURES
    B = s_ref.shape[0]

    def P(name):
        r, nr, nc = _P_OFF[name]
        return p_ref[r:r + nr, 0:nc]         # static, 8-aligned slab slice

    s2 = s_ref[...]                          # (B, T*F): row b = [x_0 | x_1 | ... ]
    feat = feat_ref[...]                     # (B, 1)
    act = act_ref[...]                       # (B, 1)
    z = z_ref[...]                           # (1, 1)

    # ---------------- LSTM (PyTorch gate order i, f, g, o) ----------------
    wih = P("wih")                           # (F, 4H)
    whh = P("whh")                           # (H, 4H)
    bls = P("bls")                           # (1, 4H)
    wih_rows = [wih[ff:ff + 1, :] for ff in range(F)]   # hoisted (1, 4H) rows

    h = jnp.zeros((B, H), f32)
    c = jnp.zeros((B, H), f32)
    for t in range(T):                       # static trip count -> fully unrolled
        # input projection on the VPU (F broadcast-FMAs); independent of h,
        # so it stays off the serial recurrence chain.
        xw = bls
        for ff in range(F):
            col = t * F + ff
            xw = xw + s2[:, col:col + 1] * wih_rows[ff]
        # single fused recurrent matmul: the only MXU op on the serial chain
        pre = xw + jnp.dot(h, whh, preferred_element_type=f32)          # (B, 4H)
        gi = jax.nn.sigmoid(pre[:, 0:H])
        gf = jax.nn.sigmoid(pre[:, H:2 * H])
        gg = jnp.tanh(pre[:, 2 * H:3 * H])
        go = jax.nn.sigmoid(pre[:, 3 * H:4 * H])
        c = gf * c + gi * gg
        h = go * jnp.tanh(c)
    lstm_out = h                                                         # (B, H)

    # ------ fused head entry: ValueModule.fc1 + GlucoseModel.fc1 ------
    #  lanes [0:34]  = concat(lstm_out, feat)   @ W1  + b1
    #  lanes [48:64] = concat(lstm_out, action) @ Wg1 + bg1
    a = jax.nn.relu(jnp.dot(lstm_out, P("whead"), preferred_element_type=f32)
                    + feat * P("w1b") + act * P("wg1b") + P("bhead"))    # (B, 64)

    # ---------------- ValueModule tail ----------------
    f1 = a[:, 0:LH_V]                                                    # lane offset 0
    f2 = jax.nn.relu(jnp.dot(f1, P("w2"), preferred_element_type=f32) + P("b2"))
    f3 = jax.nn.relu(jnp.dot(f2, P("w3"), preferred_element_type=f32) + P("b3"))
    value = jnp.dot(f3, P("wv"), preferred_element_type=f32) + P("bv")   # (B, 1)

    # ---------------- GlucoseModel tail (mu & sigma from one matmul) ----------------
    # wmsg rows outside [48:64) are zero, so `a` is used directly (no g1 lane slice).
    msg = jnp.dot(a, P("wmsg"), preferred_element_type=f32) + P("bmsg")  # (B, 2)
    mu = jnp.tanh(msg[:, 0:1])
    sg = jax.nn.softplus(msg[:, 1:2])        # +1e-5 already folded into bmsg
    cgm = jnp.clip(mu + sg * z, -1.0, 1.0)

    out_ref[...] = jnp.concatenate([value, mu, sg, cgm], axis=1)         # (B, 4)


# =============================== wrapper ====================================
def _critic_forward_impl(s, feat, action, param_slab, z):
    """s: (B, T, F) batch-first; feat: (B, 1, NH); action: (B, A); z: (1, 1)."""
    B, T, F = s.shape
    # Only free reshapes (no pad / transpose / concat) -> no host-side packing op.
    s2 = s.reshape(B, T * F)
    feat2 = feat.reshape(B, -1)              # == feat.squeeze(1) in 'batch' mode
    z2 = jnp.reshape(z, (1, 1))

    vmem = pl.BlockSpec(memory_space=pltpu.MemorySpace.VMEM)
    # TODO(synk): on v7x, many independent critic evaluations should be stacked
    # behind a leading "parallel" grid axis to use both TensorCores; a single
    # B=2 forward occupies one core.
    out = pl.pallas_call(
        critic_kernel,
        out_shape=jax.ShapeDtypeStruct((B, OUT_COLS), jnp.float32),
        in_specs=[vmem] * 5,
        out_specs=vmem,
    )(s2, feat2, action, z2, param_slab)

    return out[:, 0:1], out[:, 1:2], out[:, 2:3], out[:, 3:4]


critic_forward = jax.jit(_critic_forward_impl)


# ----- deterministic parameter construction (mimics nn.Linear / nn.LSTM init) -----
def _linear_init(key, out_f, in_f):
    k1, k2 = jax.random.split(key)
    bound = 1.0 / math.sqrt(in_f)
    w = jax.random.uniform(k1, (out_f, in_f), jnp.float32, -bound, bound)
    b = jax.random.uniform(k2, (out_f,), jnp.float32, -bound, bound)
    return w, b


def _normed_linear_init(key, out_f, in_f, scale):
    w, b = _linear_init(key, out_f, in_f)
    w = w * (scale / jnp.linalg.norm(w, axis=1, keepdims=True))
    return w, b


def build_params(key):
    """Returns the logical parameter list (transposed weights, row biases)."""
    ks = jax.random.split(key, 10)
    H = N_HIDDEN
    bound = 1.0 / math.sqrt(H)
    wih = jax.random.uniform(ks[0], (4 * H, N_FEATURES), jnp.float32, -bound, bound)
    whh = jax.random.uniform(ks[1], (4 * H, H), jnp.float32, -bound, bound)
    bih = jax.random.uniform(ks[2], (4 * H,), jnp.float32, -bound, bound)
    bhh = jax.random.uniform(ks[3], (4 * H,), jnp.float32, -bound, bound)

    w1, b1 = _linear_init(ks[4], LH_V, FE_V)
    w2, b2 = _linear_init(ks[5], LH_V, LH_V)
    w3, b3 = _linear_init(ks[6], LH_V, LH_V)
    wv, bv = _normed_linear_init(ks[7], N_ACTION, LH_V, 0.1)

    wg1, bg1 = _linear_init(ks[8], LH_G, FE_G + N_ACTION)
    kmu, ksg = jax.random.split(ks[9])
    wmu, bmu = _normed_linear_init(kmu, N_ACTION, LH_G, 0.1)
    wsg, bsg = _normed_linear_init(ksg, N_ACTION, LH_G, 0.1)

    def t(w):
        return jnp.transpose(w)

    def row(b):
        return b.reshape(1, -1)

    return [
        t(wih), t(whh), row(bih + bhh),
        t(w1), row(b1), t(w2), row(b2), t(w3), row(b3), t(wv), row(bv),
        t(wg1), row(bg1), t(wmu), row(bmu), t(wsg), row(bsg),
    ]


def pack_params(params):
    """Pack all logical params into a single (288, 64) f32 slab (built once)."""
    (wih_t, whh_t, bls, w1_t, b1, w2_t, b2, w3_t, b3, wv_t, bv,
     wg1_t, bg1, wmu_t, bmu, wsg_t, bsg) = params

    # fused head-entry weight: [W1a (lanes 0:34) | 0 | Wg1a (lanes 48:64)]
    whead = jnp.zeros((FE_G, HEAD_COLS), jnp.float32)
    whead = whead.at[:, 0:LH_V].set(w1_t[0:FE_G, :])
    whead = whead.at[:, G1_OFF:G1_OFF + LH_G].set(wg1_t[0:FE_G, :])

    w1b = jnp.zeros((1, HEAD_COLS), jnp.float32).at[:, 0:LH_V].set(w1_t[FE_G:FE_V, :])
    wg1b = (jnp.zeros((1, HEAD_COLS), jnp.float32)
            .at[:, G1_OFF:G1_OFF + LH_G].set(wg1_t[FE_G:FE_G + N_ACTION, :]))
    bhead = jnp.zeros((1, HEAD_COLS), jnp.float32).at[:, 0:LH_V].set(b1)
    bhead = bhead.at[:, G1_OFF:G1_OFF + LH_G].set(bg1)

    # fused mu/sigma weight, zero-padded so it applies to the full 64-lane head.
    wmsg = jnp.zeros((HEAD_COLS, 2), jnp.float32)
    wmsg = wmsg.at[G1_OFF:, 0:1].set(wmu_t)
    wmsg = wmsg.at[G1_OFF:, 1:2].set(wsg_t)
    bmsg = jnp.concatenate([bmu, bsg + 1e-5], axis=1)   # fold softplus(x+1e-5) epsilon

    d = {"wih": wih_t, "whh": whh_t, "bls": bls, "whead": whead, "w1b": w1b,
         "wg1b": wg1b, "bhead": bhead, "w2": w2_t, "b2": b2, "w3": w3_t,
         "b3": b3, "wv": wv_t, "bv": bv, "wmsg": wmsg, "bmsg": bmsg}

    slab = jnp.zeros((_P_ROWS, SLAB_COLS), jnp.float32)
    for name, _ in _PARAM_SHAPES:
        r, nr, nc = _P_OFF[name]
        slab = slab.at[r:r + nr, 0:nc].set(d[name])
    return slab


# ----- pure-JAX reference (mirrors the PyTorch forward) -----
def reference_forward(s, feat, action, p, z):
    (wih_t, whh_t, bls, w1_t, b1, w2_t, b2, w3_t, b3, wv_t, bv,
     wg1_t, bg1, wmu_t, bmu, wsg_t, bsg) = p
    B, T, _ = s.shape
    H = N_HIDDEN
    h = jnp.zeros((B, H), jnp.float32)
    c = jnp.zeros((B, H), jnp.float32)
    for t in range(T):
        x = s[:, t, :]
        gates = x @ wih_t + h @ whh_t + bls
        i = jax.nn.sigmoid(gates[:, :H])
        f = jax.nn.sigmoid(gates[:, H:2 * H])
        g = jnp.tanh(gates[:, 2 * H:3 * H])
        o = jax.nn.sigmoid(gates[:, 3 * H:])
        c = f * c + i * g
        h = o * jnp.tanh(c)
    lstm_out = h
    extract = jnp.concatenate([lstm_out, feat], axis=1)
    f1 = jax.nn.relu(extract @ w1_t + b1)
    f2 = jax.nn.relu(f1 @ w2_t + b2)
    f3 = jax.nn.relu(f2 @ w3_t + b3)
    value = f3 @ wv_t + bv
    sa = jnp.concatenate([lstm_out, action], axis=1)
    g1 = jax.nn.relu(sa @ wg1_t + bg1)
    mu = jnp.tanh(g1 @ wmu_t + bmu)
    sg = jax.nn.softplus(g1 @ wsg_t + bsg + 1e-5)
    cgm = jnp.clip(mu + sg * z[0, 0], -1.0, 1.0)
    return value, mu, sg, cgm


if __name__ == "__main__":
    key = jax.random.PRNGKey(0)
    kp, ks, kf, ka, kz = jax.random.split(key, 5)

    params = build_params(kp)
    param_slab = pack_params(params)

    s = jax.random.normal(ks, (BATCH, SEQ, N_FEATURES), jnp.float32)
    feat3 = jax.random.normal(kf, (BATCH, 1, N_HANDCRAFTED), jnp.float32)
    action = jax.random.normal(ka, (BATCH, N_ACTION), jnp.float32)
    # TODO(synk): z is the torch.distributions.Normal(0,1) sample; it is provided
    # as an input (host-side sample) rather than drawn in-kernel.
    z = jax.random.normal(kz, (1, 1), jnp.float32)

    outs = critic_forward(s, feat3, action, param_slab, z)
    outs = jax.block_until_ready(outs)

    refs = reference_forward(s, feat3[:, 0, :], action, params, z)
    names = ("value", "cgm_mu", "cgm_sigma", "cgm")
    for name, a, b in zip(names, outs, refs):
        assert a.shape == b.shape, (name, a.shape, b.shape)
        assert jnp.allclose(a, b, atol=1e-4, rtol=1e-4), (name, a, b)

    print("KERNEL_OK")
</pallas_src>

<mosaic_0001>
module attributes {stable_mosaic.version = 11 : i64} {
  func.func @critic_kernel(%arg0: memref<2x16xf32, #tpu.memory_space<vmem>>, %arg1: memref<2x1xf32, #tpu.memory_space<vmem>>, %arg2: memref<2x1xf32, #tpu.memory_space<vmem>>, %arg3: memref<1x1xf32, #tpu.memory_space<vmem>>, %arg4: memref<288x64xf32, #tpu.memory_space<vmem>>, %arg5: memref<2x4xf32, #tpu.memory_space<vmem>>) attributes {dimension_semantics = [], scalar_prefetch = 0 : i64, scratch_operands = 0 : i64, tpu.core_type = #tpu.core_type<tc>} {
    %c0 = arith.constant 0 : index
    %c0_0 = arith.constant 0 : index
    %0 = vector.load %arg0[%c0, %c0_0] : memref<2x16xf32, #tpu.memory_space<vmem>>, vector<2x16xf32>
    %c0_1 = arith.constant 0 : index
    %c0_2 = arith.constant 0 : index
    %1 = vector.load %arg1[%c0_1, %c0_2] : memref<2x1xf32, #tpu.memory_space<vmem>>, vector<2x1xf32>
    %c0_3 = arith.constant 0 : index
    %c0_4 = arith.constant 0 : index
    %2 = vector.load %arg2[%c0_3, %c0_4] : memref<2x1xf32, #tpu.memory_space<vmem>>, vector<2x1xf32>
    %c0_5 = arith.constant 0 : index
    %c0_6 = arith.constant 0 : index
    %3 = vector.load %arg3[%c0_5, %c0_6] : memref<1x1xf32, #tpu.memory_space<vmem>>, vector<1x1xf32>
    %c0_7 = arith.constant 0 : index
    %c0_8 = arith.constant 0 : index
    %4 = vector.load %arg4[%c0_7, %c0_8] : memref<288x64xf32, #tpu.memory_space<vmem>>, vector<2x64xf32>
    %c8 = arith.constant 8 : index
    %c0_9 = arith.constant 0 : index
    %5 = vector.load %arg4[%c8, %c0_9] : memref<288x64xf32, #tpu.memory_space<vmem>>, vector<16x64xf32>
    %c24 = arith.constant 24 : index
    %c0_10 = arith.constant 0 : index
    %6 = vector.load %arg4[%c24, %c0_10] : memref<288x64xf32, #tpu.memory_space<vmem>>, vector<1x64xf32>
    %7 = vector.extract_strided_slice %4 {offsets = [0, 0], sizes = [1, 64], strides = [1, 1]} : vector<2x64xf32> to vector<1x64xf32>
    %8 = vector.extract_strided_slice %4 {offsets = [1, 0], sizes = [1, 64], strides = [1, 1]} : vector<2x64xf32> to vector<1x64xf32>
    %cst = arith.constant 0.000000e+00 : f32
    %9 = vector.broadcast %cst : f32 to vector<2x16xf32>
    %cst_11 = arith.constant 0.000000e+00 : f32
    %10 = vector.broadcast %cst_11 : f32 to vector<2x16xf32>
    %11 = vector.extract_strided_slice %0 {offsets = [0, 0], sizes = [2, 1], strides = [1, 1]} : vector<2x16xf32> to vector<2x1xf32>
    %12 = vector.broadcast %11 : vector<2x1xf32> to vector<2x64xf32>
    %13 = vector.broadcast %7 : vector<1x64xf32> to vector<2x64xf32>
    %14 = arith.mulf %12, %13 : vector<2x64xf32>
    %15 = vector.broadcast %6 : vector<1x64xf32> to vector<2x64xf32>
    %16 = arith.addf %15, %14 : vector<2x64xf32>
    %17 = vector.extract_strided_slice %0 {offsets = [0, 1], sizes = [2, 1], strides = [1, 1]} : vector<2x16xf32> to vector<2x1xf32>
    %18 = vector.broadcast %17 : vector<2x1xf32> to vector<2x64xf32>
    %19 = vector.broadcast %8 : vector<1x64xf32> to vector<2x64xf32>
    %20 = arith.mulf %18, %19 : vector<2x64xf32>
    %21 = arith.addf %16, %20 : vector<2x64xf32>
    %cst_12 = arith.constant dense<0.000000e+00> : vector<2x64xf32>
    %22 = tpu.matmul %9, %5, %cst_12 {dimension_numbers = #tpu.dot_dimension_numbers<[1], [0], [0], [1], [0, 0, 1, 1], [], []>} : vector<2x16xf32>, vector<16x64xf32>, vector<2x64xf32> -> vector<2x64xf32>
    %23 = arith.addf %21, %22 : vector<2x64xf32>
    %24 = vector.extract_strided_slice %23 {offsets = [0, 0], sizes = [2, 16], strides = [1, 1]} : vector<2x64xf32> to vector<2x16xf32>
    %25 = arith.negf %24 : vector<2x16xf32>
    %26 = math.exp %25 : vector<2x16xf32>
    %cst_13 = arith.constant 1.000000e+00 : f32
    %27 = vector.broadcast %cst_13 : f32 to vector<2x16xf32>
    %28 = arith.addf %27, %26 : vector<2x16xf32>
    %29 = arith.divf %27, %28 : vector<2x16xf32>
    %30 = vector.extract_strided_slice %23 {offsets = [0, 16], sizes = [2, 16], strides = [1, 1]} : vector<2x64xf32> to vector<2x16xf32>
    %31 = arith.negf %30 : vector<2x16xf32>
    %32 = math.exp %31 : vector<2x16xf32>
    %cst_14 = arith.constant 1.000000e+00 : f32
    %33 = vector.broadcast %cst_14 : f32 to vector<2x16xf32>
    %34 = arith.addf %33, %32 : vector<2x16xf32>
    %35 = arith.divf %33, %34 : vector<2x16xf32>
    %36 = vector.extract_strided_slice %23 {offsets = [0, 32], sizes = [2, 16], strides = [1, 1]} : vector<2x64xf32> to vector<2x16xf32>
    %37 = math.tanh %36 : vector<2x16xf32>
    %38 = vector.extract_strided_slice %23 {offsets = [0, 48], sizes = [2, 16], strides = [1, 1]} : vector<2x64xf32> to vector<2x16xf32>
    %39 = arith.negf %38 : vector<2x16xf32>
    %40 = math.exp %39 : vector<2x16xf32>
    %cst_15 = arith.constant 1.000000e+00 : f32
    %41 = vector.broadcast %cst_15 : f32 to vector<2x16xf32>
    %42 = arith.addf %41, %40 : vector<2x16xf32>
    %43 = arith.divf %41, %42 : vector<2x16xf32>
    %44 = arith.mulf %35, %10 : vector<2x16xf32>
    %45 = arith.mulf %29, %37 : vector<2x16xf32>
    %46 = arith.addf %44, %45 : vector<2x16xf32>
    %47 = math.tanh %46 : vector<2x16xf32>
    %48 = arith.mulf %43, %47 : vector<2x16xf32>
    %49 = vector.extract_strided_slice %0 {offsets = [0, 2], sizes = [2, 1], strides = [1, 1]} : vector<2x16xf32> to vector<2x1xf32>
    %50 = vector.broadcast %49 : vector<2x1xf32> to vector<2x64xf32>
    %51 = vector.broadcast %7 : vector<1x64xf32> to vector<2x64xf32>
    %52 = arith.mulf %50, %51 : vector<2x64xf32>
    %53 = vector.broadcast %6 : vector<1x64xf32> to vector<2x64xf32>
    %54 = arith.addf %53, %52 : vector<2x64xf32>
    %55 = vector.extract_strided_slice %0 {offsets = [0, 3], sizes = [2, 1], strides = [1, 1]} : vector<2x16xf32> to vector<2x1xf32>
    %56 = vector.broadcast %55 : vector<2x1xf32> to vector<2x64xf32>
    %57 = vector.broadcast %8 : vector<1x64xf32> to vector<2x64xf32>
    %58 = arith.mulf %56, %57 : vector<2x64xf32>
    %59 = arith.addf %54, %58 : vector<2x64xf32>
    %cst_16 = arith.constant dense<0.000000e+00> : vector<2x64xf32>
    %60 = tpu.matmul %48, %5, %cst_16 {dimension_numbers = #tpu.dot_dimension_numbers<[1], [0], [0], [1], [0, 0, 1, 1], [], []>} : vector<2x16xf32>, vector<16x64xf32>, vector<2x64xf32> -> vector<2x64xf32>
    %61 = arith.addf %59, %60 : vector<2x64xf32>
    %62 = vector.extract_strided_slice %61 {offsets = [0, 0], sizes = [2, 16], strides = [1, 1]} : vector<2x64xf32> to vector<2x16xf32>
    %63 = arith.negf %62 : vector<2x16xf32>
    %64 = math.exp %63 : vector<2x16xf32>
    %cst_17 = arith.constant 1.000000e+00 : f32
    %65 = vector.broadcast %cst_17 : f32 to vector<2x16xf32>
    %66 = arith.addf %65, %64 : vector<2x16xf32>
    %67 = arith.divf %65, %66 : vector<2x16xf32>
    %68 = vector.extract_strided_slice %61 {offsets = [0, 16], sizes = [2, 16], strides = [1, 1]} : vector<2x64xf32> to vector<2x16xf32>
    %69 = arith.negf %68 : vector<2x16xf32>
    %70 = math.exp %69 : vector<2x16xf32>
    %cst_18 = arith.constant 1.000000e+00 : f32
    %71 = vector.broadcast %cst_18 : f32 to vector<2x16xf32>
    %72 = arith.addf %71, %70 : vector<2x16xf32>
    %73 = arith.divf %71, %72 : vector<2x16xf32>
    %74 = vector.extract_strided_slice %61 {offsets = [0, 32], sizes = [2, 16], strides = [1, 1]} : vector<2x64xf32> to vector<2x16xf32>
    %75 = math.tanh %74 : vector<2x16xf32>
    %76 = vector.extract_strided_slice %61 {offsets = [0, 48], sizes = [2, 16], strides = [1, 1]} : vector<2x64xf32> to vector<2x16xf32>
    %77 = arith.negf %76 : vector<2x16xf32>
    %78 = math.exp %77 : vector<2x16xf32>
    %cst_19 = arith.constant 1.000000e+00 : f32
    %79 = vector.broadcast %cst_19 : f32 to vector<2x16xf32>
    %80 = arith.addf %79, %78 : vector<2x16xf32>
    %81 = arith.divf %79, %80 : vector<2x16xf32>
    %82 = arith.mulf %73, %46 : vector<2x16xf32>
    %83 = arith.mulf %67, %75 : vector<2x16xf32>
    %84 = arith.addf %82, %83 : vector<2x16xf32>
    %85 = math.tanh %84 : vector<2x16xf32>
    %86 = arith.mulf %81, %85 : vector<2x16xf32>
    %87 = vector.extract_strided_slice %0 {offsets = [0, 4], sizes = [2, 1], strides = [1, 1]} : vector<2x16xf32> to vector<2x1xf32>
    %88 = vector.broadcast %87 : vector<2x1xf32> to vector<2x64xf32>
    %89 = vector.broadcast %7 : vector<1x64xf32> to vector<2x64xf32>
    %90 = arith.mulf %88, %89 : vector<2x64xf32>
    %91 = vector.broadcast %6 : vector<1x64xf32> to vector<2x64xf32>
    %92 = arith.addf %91, %90 : vector<2x64xf32>
    %93 = vector.extract_strided_slice %0 {offsets = [0, 5], sizes = [2, 1], strides = [1, 1]} : vector<2x16xf32> to vector<2x1xf32>
    %94 = vector.broadcast %93 : vector<2x1xf32> to vector<2x64xf32>
    %95 = vector.broadcast %8 : vector<1x64xf32> to vector<2x64xf32>
    %96 = arith.mulf %94, %95 : vector<2x64xf32>
    %97 = arith.addf %92, %96 : vector<2x64xf32>
    %cst_20 = arith.constant dense<0.000000e+00> : vector<2x64xf32>
    %98 = tpu.matmul %86, %5, %cst_20 {dimension_numbers = #tpu.dot_dimension_numbers<[1], [0], [0], [1], [0, 0, 1, 1], [], []>} : vector<2x16xf32>, vector<16x64xf32>, vector<2x64xf32> -> vector<2x64xf32>
    %99 = arith.addf %97, %98 : vector<2x64xf32>
    %100 = vector.extract_strided_slice %99 {offsets = [0, 0], sizes = [2, 16], strides = [1, 1]} : vector<2x64xf32> to vector<2x16xf32>
    %101 = arith.negf %100 : vector<2x16xf32>
    %102 = math.exp %101 : vector<2x16xf32>
    %cst_21 = arith.constant 1.000000e+00 : f32
    %103 = vector.broadcast %cst_21 : f32 to vector<2x16xf32>
    %104 = arith.addf %103, %102 : vector<2x16xf32>
    %105 = arith.divf %103, %104 : vector<2x16xf32>
    %106 = vector.extract_strided_slice %99 {offsets = [0, 16], sizes = [2, 16], strides = [1, 1]} : vector<2x64xf32> to vector<2x16xf32>
    %107 = arith.negf %106 : vector<2x16xf32>
    %108 = math.exp %107 : vector<2x16xf32>
    %cst_22 = arith.constant 1.000000e+00 : f32
    %109 = vector.broadcast %cst_22 : f32 to vector<2x16xf32>
    %110 = arith.addf %109, %108 : vector<2x16xf32>
    %111 = arith.divf %109, %110 : vector<2x16xf32>
    %112 = vector.extract_strided_slice %99 {offsets = [0, 32], sizes = [2, 16], strides = [1, 1]} : vector<2x64xf32> to vector<2x16xf32>
    %113 = math.tanh %112 : vector<2x16xf32>
    %114 = vector.extract_strided_slice %99 {offsets = [0, 48], sizes = [2, 16], strides = [1, 1]} : vector<2x64xf32> to vector<2x16xf32>
    %115 = arith.negf %114 : vector<2x16xf32>
    %116 = math.exp %115 : vector<2x16xf32>
    %cst_23 = arith.constant 1.000000e+00 : f32
    %117 = vector.broadcast %cst_23 : f32 to vector<2x16xf32>
    %118 = arith.addf %117, %116 : vector<2x16xf32>
    %119 = arith.divf %117, %118 : vector<2x16xf32>
    %120 = arith.mulf %111, %84 : vector<2x16xf32>
    %121 = arith.mulf %105, %113 : vector<2x16xf32>
    %122 = arith.addf %120, %121 : vector<2x16xf32>
    %123 = math.tanh %122 : vector<2x16xf32>
    %124 = arith.mulf %119, %123 : vector<2x16xf32>
    %125 = vector.extract_strided_slice %0 {offsets = [0, 6], sizes = [2, 1], strides = [1, 1]} : vector<2x16xf32> to vector<2x1xf32>
    %126 = vector.broadcast %125 : vector<2x1xf32> to vector<2x64xf32>
    %127 = vector.broadcast %7 : vector<1x64xf32> to vector<2x64xf32>
    %128 = arith.mulf %126, %127 : vector<2x64xf32>
    %129 = vector.broadcast %6 : vector<1x64xf32> to vector<2x64xf32>
    %130 = arith.addf %129, %128 : vector<2x64xf32>
    %131 = vector.extract_strided_slice %0 {offsets = [0, 7], sizes = [2, 1], strides = [1, 1]} : vector<2x16xf32> to vector<2x1xf32>
    %132 = vector.broadcast %131 : vector<2x1xf32> to vector<2x64xf32>
    %133 = vector.broadcast %8 : vector<1x64xf32> to vector<2x64xf32>
    %134 = arith.mulf %132, %133 : vector<2x64xf32>
    %135 = arith.addf %130, %134 : vector<2x64xf32>
    %cst_24 = arith.constant dense<0.000000e+00> : vector<2x64xf32>
    %136 = tpu.matmul %124, %5, %cst_24 {dimension_numbers = #tpu.dot_dimension_numbers<[1], [0], [0], [1], [0, 0, 1, 1], [], []>} : vector<2x16xf32>, vector<16x64xf32>, vector<2x64xf32> -> vector<2x64xf32>
    %137 = arith.addf %135, %136 : vector<2x64xf32>
    %138 = vector.extract_strided_slice %137 {offsets = [0, 0], sizes = [2, 16], strides = [1, 1]} : vector<2x64xf32> to vector<2x16xf32>
    %139 = arith.negf %138 : vector<2x16xf32>
    %140 = math.exp %139 : vector<2x16xf32>
    %cst_25 = arith.constant 1.000000e+00 : f32
    %141 = vector.broadcast %cst_25 : f32 to vector<2x16xf32>
    %142 = arith.addf %141, %140 : vector<2x16xf32>
    %143 = arith.divf %141, %142 : vector<2x16xf32>
    %144 = vector.extract_strided_slice %137 {offsets = [0, 16], sizes = [2, 16], strides = [1, 1]} : vector<2x64xf32> to vector<2x16xf32>
    %145 = arith.negf %144 : vector<2x16xf32>
    %146 = math.exp %145 : vector<2x16xf32>
    %cst_26 = arith.constant 1.000000e+00 : f32
    %147 = vector.broadcast %cst_26 : f32 to vector<2x16xf32>
    %148 = arith.addf %147, %146 : vector<2x16xf32>
    %149 = arith.divf %147, %148 : vector<2x16xf32>
    %150 = vector.extract_strided_slice %137 {offsets = [0, 32], sizes = [2, 16], strides = [1, 1]} : vector<2x64xf32> to vector<2x16xf32>
    %151 = math.tanh %150 : vector<2x16xf32>
    %152 = vector.extract_strided_slice %137 {offsets = [0, 48], sizes = [2, 16], strides = [1, 1]} : vector<2x64xf32> to vector<2x16xf32>
    %153 = arith.negf %152 : vector<2x16xf32>
    %154 = math.exp %153 : vector<2x16xf32>
    %cst_27 = arith.constant 1.000000e+00 : f32
    %155 = vector.broadcast %cst_27 : f32 to vector<2x16xf32>
    %156 = arith.addf %155, %154 : vector<2x16xf32>
    %157 = arith.divf %155, %156 : vector<2x16xf32>
    %158 = arith.mulf %149, %122 : vector<2x16xf32>
    %159 = arith.mulf %143, %151 : vector<2x16xf32>
    %160 = arith.addf %158, %159 : vector<2x16xf32>
    %161 = math.tanh %160 : vector<2x16xf32>
    %162 = arith.mulf %157, %161 : vector<2x16xf32>
    %163 = vector.extract_strided_slice %0 {offsets = [0, 8], sizes = [2, 1], strides = [1, 1]} : vector<2x16xf32> to vector<2x1xf32>
    %164 = vector.broadcast %163 : vector<2x1xf32> to vector<2x64xf32>
    %165 = vector.broadcast %7 : vector<1x64xf32> to vector<2x64xf32>
    %166 = arith.mulf %164, %165 : vector<2x64xf32>
    %167 = vector.broadcast %6 : vector<1x64xf32> to vector<2x64xf32>
    %168 = arith.addf %167, %166 : vector<2x64xf32>
    %169 = vector.extract_strided_slice %0 {offsets = [0, 9], sizes = [2, 1], strides = [1, 1]} : vector<2x16xf32> to vector<2x1xf32>
    %170 = vector.broadcast %169 : vector<2x1xf32> to vector<2x64xf32>
    %171 = vector.broadcast %8 : vector<1x64xf32> to vector<2x64xf32>
    %172 = arith.mulf %170, %171 : vector<2x64xf32>
    %173 = arith.addf %168, %172 : vector<2x64xf32>
    %cst_28 = arith.constant dense<0.000000e+00> : vector<2x64xf32>
    %174 = tpu.matmul %162, %5, %cst_28 {dimension_numbers = #tpu.dot_dimension_numbers<[1], [0], [0], [1], [0, 0, 1, 1], [], []>} : vector<2x16xf32>, vector<16x64xf32>, vector<2x64xf32> -> vector<2x64xf32>
    %175 = arith.addf %173, %174 : vector<2x64xf32>
    %176 = vector.extract_strided_slice %175 {offsets = [0, 0], sizes = [2, 16], strides = [1, 1]} : vector<2x64xf32> to vector<2x16xf32>
    %177 = arith.negf %176 : vector<2x16xf32>
    %178 = math.exp %177 : vector<2x16xf32>
    %cst_29 = arith.constant 1.000000e+00 : f32
    %179 = vector.broadcast %cst_29 : f32 to vector<2x16xf32>
    %180 = arith.addf %179, %178 : vector<2x16xf32>
    %181 = arith.divf %179, %180 : vector<2x16xf32>
    %182 = vector.extract_strided_slice %175 {offsets = [0, 16], sizes = [2, 16], strides = [1, 1]} : vector<2x64xf32> to vector<2x16xf32>
    %183 = arith.negf %182 : vector<2x16xf32>
    %184 = math.exp %183 : vector<2x16xf32>
    %cst_30 = arith.constant 1.000000e+00 : f32
    %185 = vector.broadcast %cst_30 : f32 to vector<2x16xf32>
    %186 = arith.addf %185, %184 : vector<2x16xf32>
    %187 = arith.divf %185, %186 : vector<2x16xf32>
    %188 = vector.extract_strided_slice %175 {offsets = [0, 32], sizes = [2, 16], strides = [1, 1]} : vector<2x64xf32> to vector<2x16xf32>
    %189 = math.tanh %188 : vector<2x16xf32>
    %190 = vector.extract_strided_slice %175 {offsets = [0, 48], sizes = [2, 16], strides = [1, 1]} : vector<2x64xf32> to vector<2x16xf32>
    %191 = arith.negf %190 : vector<2x16xf32>
    %192 = math.exp %191 : vector<2x16xf32>
    %cst_31 = arith.constant 1.000000e+00 : f32
    %193 = vector.broadcast %cst_31 : f32 to vector<2x16xf32>
    %194 = arith.addf %193, %192 : vector<2x16xf32>
    %195 = arith.divf %193, %194 : vector<2x16xf32>
    %196 = arith.mulf %187, %160 : vector<2x16xf32>
    %197 = arith.mulf %181, %189 : vector<2x16xf32>
    %198 = arith.addf %196, %197 : vector<2x16xf32>
    %199 = math.tanh %198 : vector<2x16xf32>
    %200 = arith.mulf %195, %199 : vector<2x16xf32>
    %201 = vector.extract_strided_slice %0 {offsets = [0, 10], sizes = [2, 1], strides = [1, 1]} : vector<2x16xf32> to vector<2x1xf32>
    %202 = vector.broadcast %201 : vector<2x1xf32> to vector<2x64xf32>
    %203 = vector.broadcast %7 : vector<1x64xf32> to vector<2x64xf32>
    %204 = arith.mulf %202, %203 : vector<2x64xf32>
    %205 = vector.broadcast %6 : vector<1x64xf32> to vector<2x64xf32>
    %206 = arith.addf %205, %204 : vector<2x64xf32>
    %207 = vector.extract_strided_slice %0 {offsets = [0, 11], sizes = [2, 1], strides = [1, 1]} : vector<2x16xf32> to vector<2x1xf32>
    %208 = vector.broadcast %207 : vector<2x1xf32> to vector<2x64xf32>
    %209 = vector.broadcast %8 : vector<1x64xf32> to vector<2x64xf32>
    %210 = arith.mulf %208, %209 : vector<2x64xf32>
    %211 = arith.addf %206, %210 : vector<2x64xf32>
    %cst_32 = arith.constant dense<0.000000e+00> : vector<2x64xf32>
    %212 = tpu.matmul %200, %5, %cst_32 {dimension_numbers = #tpu.dot_dimension_numbers<[1], [0], [0], [1], [0, 0, 1, 1], [], []>} : vector<2x16xf32>, vector<16x64xf32>, vector<2x64xf32> -> vector<2x64xf32>
    %213 = arith.addf %211, %212 : vector<2x64xf32>
    %214 = vector.extract_strided_slice %213 {offsets = [0, 0], sizes = [2, 16], strides = [1, 1]} : vector<2x64xf32> to vector<2x16xf32>
    %215 = arith.negf %214 : vector<2x16xf32>
    %216 = math.exp %215 : vector<2x16xf32>
    %cst_33 = arith.constant 1.000000e+00 : f32
    %217 = vector.broadcast %cst_33 : f32 to vector<2x16xf32>
    %218 = arith.addf %217, %216 : vector<2x16xf32>
    %219 = arith.divf %217, %218 : vector<2x16xf32>
    %220 = vector.extract_strided_slice %213 {offsets = [0, 16], sizes = [2, 16], strides = [1, 1]} : vector<2x64xf32> to vector<2x16xf32>
    %221 = arith.negf %220 : vector<2x16xf32>
    %222 = math.exp %221 : vector<2x16xf32>
    %cst_34 = arith.constant 1.000000e+00 : f32
    %223 = vector.broadcast %cst_34 : f32 to vector<2x16xf32>
    %224 = arith.addf %223, %222 : vector<2x16xf32>
    %225 = arith.divf %223, %224 : vector<2x16xf32>
    %226 = vector.extract_strided_slice %213 {offsets = [0, 32], sizes = [2, 16], strides = [1, 1]} : vector<2x64xf32> to vector<2x16xf32>
    %227 = math.tanh %226 : vector<2x16xf32>
    %228 = vector.extract_strided_slice %213 {offsets = [0, 48], sizes = [2, 16], strides = [1, 1]} : vector<2x64xf32> to vector<2x16xf32>
    %229 = arith.negf %228 : vector<2x16xf32>
    %230 = math.exp %229 : vector<2x16xf32>
    %cst_35 = arith.constant 1.000000e+00 : f32
    %231 = vector.broadcast %cst_35 : f32 to vector<2x16xf32>
    %232 = arith.addf %231, %230 : vector<2x16xf32>
    %233 = arith.divf %231, %232 : vector<2x16xf32>
    %234 = arith.mulf %225, %198 : vector<2x16xf32>
    %235 = arith.mulf %219, %227 : vector<2x16xf32>
    %236 = arith.addf %234, %235 : vector<2x16xf32>
    %237 = math.tanh %236 : vector<2x16xf32>
    %238 = arith.mulf %233, %237 : vector<2x16xf32>
    %239 = vector.extract_strided_slice %0 {offsets = [0, 12], sizes = [2, 1], strides = [1, 1]} : vector<2x16xf32> to vector<2x1xf32>
    %240 = vector.broadcast %239 : vector<2x1xf32> to vector<2x64xf32>
    %241 = vector.broadcast %7 : vector<1x64xf32> to vector<2x64xf32>
    %242 = arith.mulf %240, %241 : vector<2x64xf32>
    %243 = vector.broadcast %6 : vector<1x64xf32> to vector<2x64xf32>
    %244 = arith.addf %243, %242 : vector<2x64xf32>
    %245 = vector.extract_strided_slice %0 {offsets = [0, 13], sizes = [2, 1], strides = [1, 1]} : vector<2x16xf32> to vector<2x1xf32>
    %246 = vector.broadcast %245 : vector<2x1xf32> to vector<2x64xf32>
    %247 = vector.broadcast %8 : vector<1x64xf32> to vector<2x64xf32>
    %248 = arith.mulf %246, %247 : vector<2x64xf32>
    %249 = arith.addf %244, %248 : vector<2x64xf32>
    %cst_36 = arith.constant dense<0.000000e+00> : vector<2x64xf32>
    %250 = tpu.matmul %238, %5, %cst_36 {dimension_numbers = #tpu.dot_dimension_numbers<[1], [0], [0], [1], [0, 0, 1, 1], [], []>} : vector<2x16xf32>, vector<16x64xf32>, vector<2x64xf32> -> vector<2x64xf32>
    %251 = arith.addf %249, %250 : vector<2x64xf32>
    %252 = vector.extract_strided_slice %251 {offsets = [0, 0], sizes = [2, 16], strides = [1, 1]} : vector<2x64xf32> to vector<2x16xf32>
    %253 = arith.negf %252 : vector<2x16xf32>
    %254 = math.exp %253 : vector<2x16xf32>
    %cst_37 = arith.constant 1.000000e+00 : f32
    %255 = vector.broadcast %cst_37 : f32 to vector<2x16xf32>
    %256 = arith.addf %255, %254 : vector<2x16xf32>
    %257 = arith.divf %255, %256 : vector<2x16xf32>
    %258 = vector.extract_strided_slice %251 {offsets = [0, 16], sizes = [2, 16], strides = [1, 1]} : vector<2x64xf32> to vector<2x16xf32>
    %259 = arith.negf %258 : vector<2x16xf32>
    %260 = math.exp %259 : vector<2x16xf32>
    %cst_38 = arith.constant 1.000000e+00 : f32
    %261 = vector.broadcast %cst_38 : f32 to vector<2x16xf32>
    %262 = arith.addf %261, %260 : vector<2x16xf32>
    %263 = arith.divf %261, %262 : vector<2x16xf32>
    %264 = vector.extract_strided_slice %251 {offsets = [0, 32], sizes = [2, 16], strides = [1, 1]} : vector<2x64xf32> to vector<2x16xf32>
    %265 = math.tanh %264 : vector<2x16xf32>
    %266 = vector.extract_strided_slice %251 {offsets = [0, 48], sizes = [2, 16], strides = [1, 1]} : vector<2x64xf32> to vector<2x16xf32>
    %267 = arith.negf %266 : vector<2x16xf32>
    %268 = math.exp %267 : vector<2x16xf32>
    %cst_39 = arith.constant 1.000000e+00 : f32
    %269 = vector.broadcast %cst_39 : f32 to vector<2x16xf32>
    %270 = arith.addf %269, %268 : vector<2x16xf32>
    %271 = arith.divf %269, %270 : vector<2x16xf32>
    %272 = arith.mulf %263, %236 : vector<2x16xf32>
    %273 = arith.mulf %257, %265 : vector<2x16xf32>
    %274 = arith.addf %272, %273 : vector<2x16xf32>
    %275 = math.tanh %274 : vector<2x16xf32>
    %276 = arith.mulf %271, %275 : vector<2x16xf32>
    %277 = vector.extract_strided_slice %0 {offsets = [0, 14], sizes = [2, 1], strides = [1, 1]} : vector<2x16xf32> to vector<2x1xf32>
    %278 = vector.broadcast %277 : vector<2x1xf32> to vector<2x64xf32>
    %279 = vector.broadcast %7 : vector<1x64xf32> to vector<2x64xf32>
    %280 = arith.mulf %278, %279 : vector<2x64xf32>
    %281 = vector.broadcast %6 : vector<1x64xf32> to vector<2x64xf32>
    %282 = arith.addf %281, %280 : vector<2x64xf32>
    %283 = vector.extract_strided_slice %0 {offsets = [0, 15], sizes = [2, 1], strides = [1, 1]} : vector<2x16xf32> to vector<2x1xf32>
    %284 = vector.broadcast %283 : vector<2x1xf32> to vector<2x64xf32>
    %285 = vector.broadcast %8 : vector<1x64xf32> to vector<2x64xf32>
    %286 = arith.mulf %284, %285 : vector<2x64xf32>
    %287 = arith.addf %282, %286 : vector<2x64xf32>
    %cst_40 = arith.constant dense<0.000000e+00> : vector<2x64xf32>
    %288 = tpu.matmul %276, %5, %cst_40 {dimension_numbers = #tpu.dot_dimension_numbers<[1], [0], [0], [1], [0, 0, 1, 1], [], []>} : vector<2x16xf32>, vector<16x64xf32>, vector<2x64xf32> -> vector<2x64xf32>
    %289 = arith.addf %287, %288 : vector<2x64xf32>
    %290 = vector.extract_strided_slice %289 {offsets = [0, 0], sizes = [2, 16], strides = [1, 1]} : vector<2x64xf32> to vector<2x16xf32>
    %291 = arith.negf %290 : vector<2x16xf32>
    %292 = math.exp %291 : vector<2x16xf32>
    %cst_41 = arith.constant 1.000000e+00 : f32
    %293 = vector.broadcast %cst_41 : f32 to vector<2x16xf32>
    %294 = arith.addf %293, %292 : vector<2x16xf32>
    %295 = arith.divf %293, %294 : vector<2x16xf32>
    %296 = vector.extract_strided_slice %289 {offsets = [0, 16], sizes = [2, 16], strides = [1, 1]} : vector<2x64xf32> to vector<2x16xf32>
    %297 = arith.negf %296 : vector<2x16xf32>
    %298 = math.exp %297 : vector<2x16xf32>
    %cst_42 = arith.constant 1.000000e+00 : f32
    %299 = vector.broadcast %cst_42 : f32 to vector<2x16xf32>
    %300 = arith.addf %299, %298 : vector<2x16xf32>
    %301 = arith.divf %299, %300 : vector<2x16xf32>
    %302 = vector.extract_strided_slice %289 {offsets = [0, 32], sizes = [2, 16], strides = [1, 1]} : vector<2x64xf32> to vector<2x16xf32>
    %303 = math.tanh %302 : vector<2x16xf32>
    %304 = vector.extract_strided_slice %289 {offsets = [0, 48], sizes = [2, 16], strides = [1, 1]} : vector<2x64xf32> to vector<2x16xf32>
    %305 = arith.negf %304 : vector<2x16xf32>
    %306 = math.exp %305 : vector<2x16xf32>
    %cst_43 = arith.constant 1.000000e+00 : f32
    %307 = vector.broadcast %cst_43 : f32 to vector<2x16xf32>
    %308 = arith.addf %307, %306 : vector<2x16xf32>
    %309 = arith.divf %307, %308 : vector<2x16xf32>
    %310 = arith.mulf %301, %274 : vector<2x16xf32>
    %311 = arith.mulf %295, %303 : vector<2x16xf32>
    %312 = arith.addf %310, %311 : vector<2x16xf32>
    %313 = math.tanh %312 : vector<2x16xf32>
    %314 = arith.mulf %309, %313 : vector<2x16xf32>
    %c32 = arith.constant 32 : index
    %c0_44 = arith.constant 0 : index
    %315 = vector.load %arg4[%c32, %c0_44] : memref<288x64xf32, #tpu.memory_space<vmem>>, vector<16x64xf32>
    %cst_45 = arith.constant dense<0.000000e+00> : vector<2x64xf32>
    %316 = tpu.matmul %314, %315, %cst_45 {dimension_numbers = #tpu.dot_dimension_numbers<[1], [0], [0], [1], [0, 0, 1, 1], [], []>} : vector<2x16xf32>, vector<16x64xf32>, vector<2x64xf32> -> vector<2x64xf32>
    %c48 = arith.constant 48 : index
    %c0_46 = arith.constant 0 : index
    %317 = vector.load %arg4[%c48, %c0_46] : memref<288x64xf32, #tpu.memory_space<vmem>>, vector<1x64xf32>
    %318 = vector.broadcast %1 : vector<2x1xf32> to vector<2x64xf32>
    %319 = vector.broadcast %317 : vector<1x64xf32> to vector<2x64xf32>
    %320 = arith.mulf %318, %319 : vector<2x64xf32>
    %321 = arith.addf %316, %320 : vector<2x64xf32>
    %c56 = arith.constant 56 : index
    %c0_47 = arith.constant 0 : index
    %322 = vector.load %arg4[%c56, %c0_47] : memref<288x64xf32, #tpu.memory_space<vmem>>, vector<1x64xf32>
    %323 = vector.broadcast %2 : vector<2x1xf32> to vector<2x64xf32>
    %324 = vector.broadcast %322 : vector<1x64xf32> to vector<2x64xf32>
    %325 = arith.mulf %323, %324 : vector<2x64xf32>
    %326 = arith.addf %321, %325 : vector<2x64xf32>
    %c64 = arith.constant 64 : index
    %c0_48 = arith.constant 0 : index
    %327 = vector.load %arg4[%c64, %c0_48] : memref<288x64xf32, #tpu.memory_space<vmem>>, vector<1x64xf32>
    %328 = vector.broadcast %327 : vector<1x64xf32> to vector<2x64xf32>
    %329 = arith.addf %326, %328 : vector<2x64xf32>
    %cst_49 = arith.constant 0.000000e+00 : f32
    %330 = vector.broadcast %cst_49 : f32 to vector<2x64xf32>
    %331 = arith.maximumf %329, %330 : vector<2x64xf32>
    %332 = vector.extract_strided_slice %331 {offsets = [0, 0], sizes = [2, 34], strides = [1, 1]} : vector<2x64xf32> to vector<2x34xf32>
    %c72 = arith.constant 72 : index
    %c0_50 = arith.constant 0 : index
    %333 = vector.load %arg4[%c72, %c0_50] : memref<288x64xf32, #tpu.memory_space<vmem>>, vector<34x34xf32>
    %cst_51 = arith.constant dense<0.000000e+00> : vector<2x34xf32>
    %334 = tpu.matmul %332, %333, %cst_51 {dimension_numbers = #tpu.dot_dimension_numbers<[1], [0], [0], [1], [0, 0, 1, 1], [], []>} : vector<2x34xf32>, vector<34x34xf32>, vector<2x34xf32> -> vector<2x34xf32>
    %c112 = arith.constant 112 : index
    %c0_52 = arith.constant 0 : index
    %335 = vector.load %arg4[%c112, %c0_52] : memref<288x64xf32, #tpu.memory_space<vmem>>, vector<1x34xf32>
    %336 = vector.broadcast %335 : vector<1x34xf32> to vector<2x34xf32>
    %337 = arith.addf %334, %336 : vector<2x34xf32>
    %cst_53 = arith.constant 0.000000e+00 : f32
    %338 = vector.broadcast %cst_53 : f32 to vector<2x34xf32>
    %339 = arith.maximumf %337, %338 : vector<2x34xf32>
    %c120 = arith.constant 120 : index
    %c0_54 = arith.constant 0 : index
    %340 = vector.load %arg4[%c120, %c0_54] : memref<288x64xf32, #tpu.memory_space<vmem>>, vector<34x34xf32>
    %cst_55 = arith.constant dense<0.000000e+00> : vector<2x34xf32>
    %341 = tpu.matmul %339, %340, %cst_55 {dimension_numbers = #tpu.dot_dimension_numbers<[1], [0], [0], [1], [0, 0, 1, 1], [], []>} : vector<2x34xf32>, vector<34x34xf32>, vector<2x34xf32> -> vector<2x34xf32>
    %c160 = arith.constant 160 : index
    %c0_56 = arith.constant 0 : index
    %342 = vector.load %arg4[%c160, %c0_56] : memref<288x64xf32, #tpu.memory_space<vmem>>, vector<1x34xf32>
    %343 = vector.broadcast %342 : vector<1x34xf32> to vector<2x34xf32>
    %344 = arith.addf %341, %343 : vector<2x34xf32>
    %cst_57 = arith.constant 0.000000e+00 : f32
    %345 = vector.broadcast %cst_57 : f32 to vector<2x34xf32>
    %346 = arith.maximumf %344, %345 : vector<2x34xf32>
    %c168 = arith.constant 168 : index
    %c0_58 = arith.constant 0 : index
    %347 = vector.load %arg4[%c168, %c0_58] : memref<288x64xf32, #tpu.memory_space<vmem>>, vector<34x1xf32>
    %cst_59 = arith.constant dense<0.000000e+00> : vector<2x1xf32>
    %348 = tpu.matmul %346, %347, %cst_59 {dimension_numbers = #tpu.dot_dimension_numbers<[1], [0], [0], [1], [0, 0, 1, 1], [], []>} : vector<2x34xf32>, vector<34x1xf32>, vector<2x1xf32> -> vector<2x1xf32>
    %c208 = arith.constant 208 : index
    %c0_60 = arith.constant 0 : index
    %349 = vector.load %arg4[%c208, %c0_60] : memref<288x64xf32, #tpu.memory_space<vmem>>, vector<1x1xf32>
    %350 = vector.broadcast %349 : vector<1x1xf32> to vector<2x1xf32>
    %351 = arith.addf %348, %350 : vector<2x1xf32>
    %c216 = arith.constant 216 : index
    %c0_61 = arith.constant 0 : index
    %352 = vector.load %arg4[%c216, %c0_61] : memref<288x64xf32, #tpu.memory_space<vmem>>, vector<64x2xf32>
    %cst_62 = arith.constant dense<0.000000e+00> : vector<2x2xf32>
    %353 = tpu.matmul %331, %352, %cst_62 {dimension_numbers = #tpu.dot_dimension_numbers<[1], [0], [0], [1], [0, 0, 1, 1], [], []>} : vector<2x64xf32>, vector<64x2xf32>, vector<2x2xf32> -> vector<2x2xf32>
    %c280 = arith.constant 280 : index
    %c0_63 = arith.constant 0 : index
    %354 = vector.load %arg4[%c280, %c0_63] : memref<288x64xf32, #tpu.memory_space<vmem>>, vector<1x2xf32>
    %355 = vector.broadcast %354 : vector<1x2xf32> to vector<2x2xf32>
    %356 = arith.addf %353, %355 : vector<2x2xf32>
    %357 = vector.extract_strided_slice %356 {offsets = [0, 0], sizes = [2, 1], strides = [1, 1]} : vector<2x2xf32> to vector<2x1xf32>
    %358 = math.tanh %357 : vector<2x1xf32>
    %359 = vector.extract_strided_slice %356 {offsets = [0, 1], sizes = [2, 1], strides = [1, 1]} : vector<2x2xf32> to vector<2x1xf32>
    %cst_64 = arith.constant 0.000000e+00 : f32
    %360 = vector.broadcast %cst_64 : f32 to vector<2x1xf32>
    %361 = arith.maximumf %359, %360 : vector<2x1xf32>
    %362 = vector.broadcast %cst_64 : f32 to vector<2x1xf32>
    %363 = arith.subf %359, %362 : vector<2x1xf32>
    %364 = arith.cmpf one, %363, %363 : vector<2x1xf32>
    %365 = vector.broadcast %cst_64 : f32 to vector<2x1xf32>
    %366 = arith.addf %359, %365 : vector<2x1xf32>
    %367 = math.absf %363 : vector<2x1xf32>
    %cst_65 = arith.constant 0.000000e+00 : f32
    %368 = vector.broadcast %cst_65 : f32 to vector<2x1xf32>
    %369 = arith.subf %368, %367 : vector<2x1xf32>
    %370 = math.exp %369 : vector<2x1xf32>
    %371 = math.log1p %370 : vector<2x1xf32>
    %372 = arith.addf %361, %371 : vector<2x1xf32>
    %373 = arith.select %364, %366, %372 : vector<2x1xi1>, vector<2x1xf32>
    %374 = vector.broadcast %3 : vector<1x1xf32> to vector<2x1xf32>
    %375 = arith.mulf %373, %374 : vector<2x1xf32>
    %376 = arith.addf %358, %375 : vector<2x1xf32>
    %cst_66 = arith.constant -1.000000e+00 : f32
    %cst_67 = arith.constant 1.000000e+00 : f32
    %377 = vector.broadcast %cst_66 : f32 to vector<2x1xf32>
    %378 = arith.maximumf %377, %376 : vector<2x1xf32>
    %379 = vector.broadcast %cst_67 : f32 to vector<2x1xf32>
    %380 = arith.minimumf %379, %378 : vector<2x1xf32>
    %381 = tpu.concatenate %351, %358, %373, %380 in 1 : vector<2x1xf32>, vector<2x1xf32>, vector<2x1xf32>, vector<2x1xf32> -> vector<2x4xf32>
    %c0_68 = arith.constant 0 : index
    %c0_69 = arith.constant 0 : index
    %382 = vector.load %arg5[%c0_68, %c0_69] : memref<2x4xf32, #tpu.memory_space<vmem>>, vector<2x4xf32>
    tpu.vector_store %arg5[%c0_68, %c0_69], %381 {strides = array<i32>} : memref<2x4xf32, #tpu.memory_space<vmem>>, vector<2x4xf32>,
    return
  }
}

</mosaic_0001>

<bundles_post_ra>
// kernel: _critic_forward_impl.1
= control target key start
LH: loop header
LB: loop body
LE: loop exit
PB: predicated region body
PF: predicated region fallthrough
CT: control target
= control target key end

     0   :  { %v1831_v0 = vmov 0.0|0.0   ;;  %vm1832_vm0 = vmmov 0   ;;  %v1833_v3 = vmov 0.0   ;;  %v1834_v6 = vmov 0   ;;  %s1836_s27 = smov 96   ;;  %s1837_s28 = smov 16   ;;  %s2169_s4 = inlined_call_operand.vmem [shape: f32[288,64], index: 4, kind: input, shape index: {}]   ;;  %s2170_s0 = inlined_call_operand.vmem [shape: f32[2,16], index: 0, kind: input, shape index: {}]   ;;  %s2171_s1 = inlined_call_operand.vmem [shape: f32[2,1], index: 1, kind: input, shape index: {}]   ;;  %s2172_s2 = inlined_call_operand.vmem [shape: f32[2,1], index: 2, kind: input, shape index: {}]   ;;  %s2173_s3 = inlined_call_operand.<no memory space> [shape: f32[1,1], index: 3, kind: input, shape index: {}]   ;;  %s2174_s5 = inlined_call_operand.vmem [shape: f32[2,4], index: 5, kind: output, shape index: {}]  }
   0x1   :  { %1660 = vmatprep.subr.bf16.mxu1 %v1831_v0  ;;  %v27_v1 = vld [vmem:[%s2169_s4 + $0x8] sm:$0xff]  ;;  %v28_v2 = vld [vmem:[%s2169_s4 + $0x10] sm:$0xff]  ;;  %1543 = vmatprep.mubr.msk.f32.mxu1 %vm1832_vm0, %v1833_v3  ;;  %v1899_v4 = vld [vmem:[%s2170_s0] sm:$0x3]  ;;  %v1835_v7 = vmov 1   ;;  %v35_v8 = vlaneseq  ;;  %s1838_s29 = smov 32  }
   0x2   :  { %v1901_v5 = vpack.c.bf16 %v28_v2, %v27_v1  ;;  %1743 = vset.pattern.permute.xlu0 %v1834_v6  ;;  %1666 = vmatprep.subr.bf16.mxu0 %v1831_v0  ;;  %v26_v11 = vld [vmem:[%s2169_s4] sm:$0x3]  ;;  %v1929_v17 = vld [vmem:[%s2169_s4 + $0x18] ss:$0 sm:$0xff]  ;;  %v1839_v36 = vmov 2   ;;  %v1840_v37 = vmov 3  }
   0x3   :  { %32 = vperm.xlu0 %1743, %v1899_v4   ;;  %1557 = vmatprep.mubr.msk.f32.mxu0 %vm1832_vm0, %v1833_v3  ;;  %v36_v9 = vshrl.u32 %v35_v8, 7  ;;  %s1841_s30 = smov 80   ;;  %vm55_vm1 = vcmask 130048   ;;  %v1842_v61 = vmov 4   ;;  %v1843_v62 = vmov 5   ;;  %s1855_s17 = smov 127  }
   0x4   :  { %1662 = vmatpush3.bf16.msra.mxu1 %v1901_v5  ;;  %1668 = vmatpush3.bf16.msra.mxu0 %v1901_v5  ;;  %vm1059_vm2 = vcmask 1041408   ;;  %vm1055_vm3 = vcmask 277504   ;;  %vm1320_vm4 = vcmask 523264   ;;  %s1856_s18 = smov 3   ;;  %vm1440_vm7 = vcmask 7168  }
   0x5   :  { %1663 = vmatprep.subr.bf16.mxu1 %v1831_v0  ;;  %1672 = vmatprep.subr.bf16.mxu0 %v1831_v0  ;;  %v37_v10 = vsub.s32 0, %v36_v9  ;;  %v51_v14 = vsub.s32 1, %v36_v9  ;;  %vm1442_vm8 = vcmask 15360   ;;  %vm1444_vm9 = vcmask 23552  }
   0x6   :  { %1745 = vset.pattern.permute.xlu1 %v1839_v36  ;;  %vm1446_vm10 = vcmask 25600  }
   0x7   :  { %1544 = vmatmul.mubr.f32.vlgmr.msra.gmra.mrb[0].mxu1 %v1833_v3  ;;  %1744 = vset.pattern.permute.xlu0 %v1835_v7  ;;  %v1921_v13 = vrot.slane %v26_v11, %v37_v10  ;;  %v1924_v16 = vrot.slane %v26_v11, %v51_v14 }
   0x8   :  { %46 = vperm.xlu0 %1744, %v1899_v4   ;;  %1665 = vmatpush3.bf16.msra.mxu1 %v1901_v5 }
   0x9   :  { %1550 = vmatprep.mubr.msk.f32.mxu1 %vm1832_vm0, %v1833_v3  ;;  %1669 = vmatprep.subr.bf16.mxu1 %v1831_v0 }
   0xc   :  { %1746 = vset.pattern.permute.xlu0 %v1840_v37 }
  0x82   :  { %v33_v12 = vpop.permute.xlu0 %32 }
  0x83   :  { %v39_v15 = vmul.f32 %v1921_v13, %v33_v12 }
  0x85   :  { %v44_v19 = vadd.f32 %v1929_v17, %v39_v15 }
  0x87   :  { %v47_v18 = vpop.permute.xlu0 %46 }
  0x88   :  { %v53_v20 = vmul.f32 %v1924_v16, %v47_v18 }
  0x8a   :  { %v54_v21 = vadd.f32 %v53_v20, %v44_v19 }
  0xda   :  { %v125_v22 = vpop.f32.mrb[0].mxu1 }
  0xdb   :  { %v129_v23 = vadd.f32 %v125_v22, %v54_v21  ;;  %v1545_v24 = vpop.f32.mrb[1].mxu1 }
  0xdd   :  { %1761 = vtanh.f32 %v129_v23  ;;  %v1453_v26 = vmul.f32 -1.442695, %v129_v23 }
  0xdf   :  { %1763 = vpow2.f32 %v1453_v26 }
  0xe7   :  { %v1762_v25 = vpop.eup %1761 }
  0xe8   :  { %139 = vrot.lane.b32.xlu1 %v1762_v25, %s1836_s27 }
  0xe9   :  { %v1764_v27 = vpop.eup %1763 }
  0xea   :  { %v133_v28 = vadd.f32 1.0, %v1764_v27 }
  0xec   :  { %1765 = vrcp.f32 %v133_v28 }
  0xf6   :  { %v1766_v29 = vpop.eup %1765 }
  0xf7   :  { %v137_v32 = vmul.f32 0.0, %v1766_v29 }
 0x15a   :  { %v140_v30 = vpop.permute.xlu1 %139 }
 0x15b   :  { %v142_v31 = vmul.f32 %v1766_v29, %v140_v30  ;;  %v1844_v30 = vmov 6  }
 0x15d   :  { %144 = vrot.lane.b32.xlu1 %v142_v31, %s1837_s28  ;;  %v1845_v31 = vmov 7  }
 0x1cf   :  { %v145_v33 = vpop.permute.xlu1 %144 }
 0x1d0   :  { %v147_v34 = vadd.f32 %v145_v33, %v137_v32 }
 0x1d2   :  { %1767 = vtanh.f32 %v147_v34 }
 0x1dc   :  { %v1768_v35 = vpop.eup %1767 }
 0x1dd   :  { %150 = vrot.lane.b32.xlu1 %v1768_v35, %s1838_s29 }
 0x1e1   :  { %155 = vperm.xlu1 %1745, %v1899_v4  }
 0x1e5   :  { %1748 = vset.pattern.permute.xlu1 %v1843_v62 }
 0x24f   :  { %v151_v38 = vpop.permute.xlu1 %150 }
 0x250   :  { %v153_v39 = vmul.f32 %v1766_v29, %v151_v38 }
 0x252   :  { %167 = vrot.lane.b32.xlu0 %v153_v39, %s1841_s30 }
 0x256   :  { %161 = vperm.xlu0 %1746, %v1899_v4  }
 0x25a   :  { %1747 = vset.pattern.permute.xlu0 %v1842_v61 }
 0x260   :  { %v156_v41 = vpop.permute.xlu1 %155 }
 0x261   :  { %v158_v42 = vmul.f32 %v156_v41, %v1921_v13 }
 0x263   :  { %v159_v44 = vadd.f32 %v1929_v17, %v158_v42 }
 0x2c4   :  { %v168_v40 = vpop.permute.xlu0 %167 }
 0x2c5   :  { %1551 = vmatmul.mubr.msk.f32.vlgmr.msra.gmra.mrb[2].mxu1 %vm55_vm1, %v168_v40 }
 0x2c6   :  { %1671 = vmatpush3.bf16.msra.mxu1 %v1901_v5  ;;  %1564 = vmatprep.mubr.msk.f32.mxu1 %vm1832_vm0, %v1833_v3 }
 0x2c7   :  { %1675 = vmatprep.subr.bf16.mxu1 %v1831_v0 }
 0x2d5   :  { %v162_v43 = vpop.permute.xlu0 %161 }
 0x2d6   :  { %v164_v45 = vmul.f32 %v162_v43, %v1924_v16 }
 0x2d8   :  { %v165_v46 = vadd.f32 %v164_v45, %v159_v44 }
 0x398   :  { %v237_v47 = vpop.f32.mrb[2].mxu1 }
 0x399   :  { %v241_v48 = vadd.f32 %v237_v47, %v165_v46  ;;  %v1552_v49 = vpop.f32.mrb[3].mxu1 }
 0x39b   :  { %1769 = vtanh.f32 %v241_v48  ;;  %v1455_v51 = vmul.f32 -1.442695, %v241_v48 }
 0x39d   :  { %1771 = vpow2.f32 %v1455_v51 }
 0x3a5   :  { %v1770_v50 = vpop.eup %1769 }
 0x3a6   :  { %251 = vrot.lane.b32.xlu1 %v1770_v50, %s1836_s27 }
 0x3a7   :  { %v1772_v52 = vpop.eup %1771 }
 0x3a8   :  { %v245_v53 = vadd.f32 1.0, %v1772_v52 }
 0x3aa   :  { %1773 = vrcp.f32 %v245_v53 }
 0x3b4   :  { %v1774_v54 = vpop.eup %1773 }
 0x3b5   :  { %v249_v57 = vmul.f32 %v1774_v54, %v147_v34 }
 0x418   :  { %v252_v55 = vpop.permute.xlu1 %251 }
 0x419   :  { %v254_v56 = vmul.f32 %v1774_v54, %v252_v55  ;;  %v1846_v55 = vmov 8  }
 0x41b   :  { %256 = vrot.lane.b32.xlu1 %v254_v56, %s1837_s28  ;;  %v1847_v56 = vmov 9  }
 0x48d   :  { %v257_v58 = vpop.permute.xlu1 %256 }
 0x48e   :  { %v259_v59 = vadd.f32 %v257_v58, %v249_v57 }
 0x490   :  { %1775 = vtanh.f32 %v259_v59 }
 0x49a   :  { %v1776_v60 = vpop.eup %1775 }
 0x49b   :  { %262 = vrot.lane.b32.xlu0 %v1776_v60, %s1838_s29 }
 0x49f   :  { %267 = vperm.xlu0 %1747, %v1899_v4  }
 0x4a3   :  { %1750 = vset.pattern.permute.xlu0 %v1845_v31 }
 0x50d   :  { %v263_v63 = vpop.permute.xlu0 %262 }
 0x50e   :  { %v265_v1 = vmul.f32 %v1774_v54, %v263_v63 }
 0x510   :  { %279 = vrot.lane.b32.xlu1 %v265_v1, %s1841_s30 }
 0x514   :  { %273 = vperm.xlu1 %1748, %v1899_v4  }
 0x518   :  { %1749 = vset.pattern.permute.xlu1 %v1844_v30 }
 0x51e   :  { %v268_v7 = vpop.permute.xlu0 %267 }
 0x51f   :  { %v270_v8 = vmul.f32 %v268_v7, %v1921_v13 }
 0x521   :  { %v271_v10 = vadd.f32 %v1929_v17, %v270_v8 }
 0x582   :  { %v280_v2 = vpop.permute.xlu1 %279 }
 0x583   :  { %1558 = vmatmul.mubr.msk.f32.vlgmr.msra.gmra.mrb[0].mxu0 %vm55_vm1, %v280_v2 }
 0x584   :  { %1674 = vmatpush3.bf16.msra.mxu0 %v1901_v5  ;;  %1571 = vmatprep.mubr.msk.f32.mxu0 %vm1832_vm0, %v1833_v3 }
 0x585   :  { %1678 = vmatprep.subr.bf16.mxu0 %v1831_v0 }
 0x593   :  { %v274_v9 = vpop.permute.xlu1 %273 }
 0x594   :  { %v276_v11 = vmul.f32 %v274_v9, %v1924_v16 }
 0x596   :  { %v277_v12 = vadd.f32 %v276_v11, %v271_v10 }
 0x656   :  { %v349_v14 = vpop.f32.mrb[0].mxu0 }
 0x657   :  { %v353_v15 = vadd.f32 %v349_v14, %v277_v12  ;;  %v1559_v18 = vpop.f32.mrb[1].mxu0 }
 0x659   :  { %1777 = vtanh.f32 %v353_v15  ;;  %v1457_v20 = vmul.f32 -1.442695, %v353_v15 }
 0x65b   :  { %1779 = vpow2.f32 %v1457_v20 }
 0x663   :  { %v1778_v19 = vpop.eup %1777 }
 0x664   :  { %363 = vrot.lane.b32.xlu1 %v1778_v19, %s1836_s27 }
 0x665   :  { %v1780_v21 = vpop.eup %1779 }
 0x666   :  { %v357_v22 = vadd.f32 1.0, %v1780_v21 }
 0x668   :  { %1781 = vrcp.f32 %v357_v22 }
 0x672   :  { %v1782_v23 = vpop.eup %1781 }
 0x673   :  { %v361_v26 = vmul.f32 %v1782_v23, %v259_v59 }
 0x6d6   :  { %v364_v24 = vpop.permute.xlu1 %363 }
 0x6d7   :  { %v366_v25 = vmul.f32 %v1782_v23, %v364_v24  ;;  %v1848_v24 = vmov 10  }
 0x6d9   :  { %368 = vrot.lane.b32.xlu0 %v366_v25, %s1837_s28  ;;  %v1849_v25 = vmov 11  }
 0x74b   :  { %v369_v27 = vpop.permute.xlu0 %368 }
 0x74c   :  { %v371_v28 = vadd.f32 %v369_v27, %v361_v26 }
 0x74e   :  { %1783 = vtanh.f32 %v371_v28 }
 0x758   :  { %v1784_v29 = vpop.eup %1783 }
 0x759   :  { %374 = vrot.lane.b32.xlu1 %v1784_v29, %s1838_s29 }
 0x75d   :  { %379 = vperm.xlu1 %1749, %v1899_v4  }
 0x761   :  { %1752 = vset.pattern.permute.xlu1 %v1847_v56 }
 0x7cb   :  { %v375_v32 = vpop.permute.xlu1 %374 }
 0x7cc   :  { %v377_v33 = vmul.f32 %v1782_v23, %v375_v32 }
 0x7ce   :  { %391 = vrot.lane.b32.xlu0 %v377_v33, %s1841_s30 }
 0x7d2   :  { %385 = vperm.xlu0 %1750, %v1899_v4  }
 0x7d6   :  { %1751 = vset.pattern.permute.xlu0 %v1846_v55 }
 0x7dc   :  { %v380_v35 = vpop.permute.xlu1 %379 }
 0x7dd   :  { %v382_v36 = vmul.f32 %v380_v35, %v1921_v13 }
 0x7df   :  { %v383_v38 = vadd.f32 %v1929_v17, %v382_v36 }
 0x840   :  { %v392_v34 = vpop.permute.xlu0 %391 }
 0x841   :  { %1565 = vmatmul.mubr.msk.f32.vlgmr.msra.gmra.mrb[4].mxu1 %vm55_vm1, %v392_v34 }
 0x842   :  { %1677 = vmatpush3.bf16.msra.mxu1 %v1901_v5  ;;  %1578 = vmatprep.mubr.msk.f32.mxu1 %vm1832_vm0, %v1833_v3 }
 0x843   :  { %1681 = vmatprep.subr.bf16.mxu1 %v1831_v0 }
 0x851   :  { %v386_v37 = vpop.permute.xlu0 %385 }
 0x852   :  { %v388_v39 = vmul.f32 %v386_v37, %v1924_v16 }
 0x854   :  { %v389_v40 = vadd.f32 %v388_v39, %v383_v38 }
 0x914   :  { %v461_v41 = vpop.f32.mrb[4].mxu1 }
 0x915   :  { %v465_v42 = vadd.f32 %v461_v41, %v389_v40  ;;  %v1566_v43 = vpop.f32.mrb[5].mxu1 }
 0x917   :  { %1785 = vtanh.f32 %v465_v42  ;;  %v1459_v45 = vmul.f32 -1.442695, %v465_v42 }
 0x919   :  { %1787 = vpow2.f32 %v1459_v45 }
 0x921   :  { %v1786_v44 = vpop.eup %1785 }
 0x922   :  { %475 = vrot.lane.b32.xlu1 %v1786_v44, %s1836_s27 }
 0x923   :  { %v1788_v46 = vpop.eup %1787 }
 0x924   :  { %v469_v47 = vadd.f32 1.0, %v1788_v46 }
 0x926   :  { %1789 = vrcp.f32 %v469_v47 }
 0x930   :  { %v1790_v48 = vpop.eup %1789 }
 0x931   :  { %v473_v51 = vmul.f32 %v1790_v48, %v371_v28 }
 0x994   :  { %v476_v49 = vpop.permute.xlu1 %475 }
 0x995   :  { %v478_v50 = vmul.f32 %v1790_v48, %v476_v49  ;;  %v1851_v49 = vmov 13  }
 0x997   :  { %480 = vrot.lane.b32.xlu1 %v478_v50, %s1837_s28 }
 0xa09   :  { %v481_v52 = vpop.permute.xlu1 %480 }
 0xa0a   :  { %v483_v53 = vadd.f32 %v481_v52, %v473_v51 }
 0xa0c   :  { %1791 = vtanh.f32 %v483_v53 }
 0xa16   :  { %v1792_v54 = vpop.eup %1791 }
 0xa17   :  { %486 = vrot.lane.b32.xlu0 %v1792_v54, %s1838_s29 }
 0xa1b   :  { %491 = vperm.xlu0 %1751, %v1899_v4  }
 0xa1f   :  { %1754 = vset.pattern.permute.xlu0 %v1849_v25 }
 0xa89   :  { %v487_v57 = vpop.permute.xlu0 %486 }
 0xa8a   :  { %v489_v58 = vmul.f32 %v1790_v48, %v487_v57  ;;  %v1850_v48 = vmov 12  }
 0xa8c   :  { %503 = vrot.lane.b32.xlu1 %v489_v58, %s1841_s30 }
 0xa90   :  { %497 = vperm.xlu1 %1752, %v1899_v4  }
 0xa94   :  { %1753 = vset.pattern.permute.xlu1 %v1848_v24 }
 0xa9a   :  { %v492_v60 = vpop.permute.xlu0 %491 }
 0xa9b   :  { %v494_v61 = vmul.f32 %v492_v60, %v1921_v13 }
 0xa9d   :  { %v495_v63 = vadd.f32 %v1929_v17, %v494_v61 }
 0xafe   :  { %v504_v59 = vpop.permute.xlu1 %503 }
 0xaff   :  { %1572 = vmatmul.mubr.msk.f32.vlgmr.msra.gmra.mrb[2].mxu0 %vm55_vm1, %v504_v59 }
 0xb00   :  { %1680 = vmatpush3.bf16.msra.mxu0 %v1901_v5  ;;  %1585 = vmatprep.mubr.msk.f32.mxu0 %vm1832_vm0, %v1833_v3 }
 0xb01   :  { %1684 = vmatprep.subr.bf16.mxu0 %v1831_v0 }
 0xb0f   :  { %v498_v62 = vpop.permute.xlu1 %497 }
 0xb10   :  { %v500_v1 = vmul.f32 %v498_v62, %v1924_v16 }
 0xb12   :  { %v501_v2 = vadd.f32 %v500_v1, %v495_v63 }
 0xbd2   :  { %v573_v7 = vpop.f32.mrb[2].mxu0 }
 0xbd3   :  { %v577_v8 = vadd.f32 %v573_v7, %v501_v2  ;;  %v1573_v9 = vpop.f32.mrb[3].mxu0 }
 0xbd5   :  { %1793 = vtanh.f32 %v577_v8  ;;  %v1461_v11 = vmul.f32 -1.442695, %v577_v8 }
 0xbd7   :  { %1795 = vpow2.f32 %v1461_v11 }
 0xbdf   :  { %v1794_v10 = vpop.eup %1793 }
 0xbe0   :  { %587 = vrot.lane.b32.xlu1 %v1794_v10, %s1836_s27 }
 0xbe1   :  { %v1796_v12 = vpop.eup %1795 }
 0xbe2   :  { %v581_v14 = vadd.f32 1.0, %v1796_v12 }
 0xbe4   :  { %1797 = vrcp.f32 %v581_v14 }
 0xbee   :  { %v1798_v15 = vpop.eup %1797 }
 0xbef   :  { %v585_v20 = vmul.f32 %v1798_v15, %v483_v53 }
 0xc52   :  { %v588_v18 = vpop.permute.xlu1 %587 }
 0xc53   :  { %v590_v19 = vmul.f32 %v1798_v15, %v588_v18  ;;  %v1853_v18 = vmov 15  }
 0xc55   :  { %592 = vrot.lane.b32.xlu0 %v590_v19, %s1837_s28 }
 0xcc7   :  { %v593_v21 = vpop.permute.xlu0 %592 }
 0xcc8   :  { %v595_v22 = vadd.f32 %v593_v21, %v585_v20 }
 0xcca   :  { %1799 = vtanh.f32 %v595_v22 }
 0xcd4   :  { %v1800_v23 = vpop.eup %1799 }
 0xcd5   :  { %598 = vrot.lane.b32.xlu1 %v1800_v23, %s1838_s29 }
 0xcd9   :  { %603 = vperm.xlu1 %1753, %v1899_v4  }
 0xcdd   :  { %1756 = vset.pattern.permute.xlu1 %v1851_v49 }
 0xd47   :  { %v599_v26 = vpop.permute.xlu1 %598 }
 0xd48   :  { %v601_v27 = vmul.f32 %v1798_v15, %v599_v26  ;;  %v1852_v15 = vmov 14  }
 0xd4a   :  { %615 = vrot.lane.b32.xlu0 %v601_v27, %s1841_s30 }
 0xd4e   :  { %609 = vperm.xlu0 %1754, %v1899_v4  }
 0xd52   :  { %1755 = vset.pattern.permute.xlu0 %v1850_v48  ;;  %v1048_v48 = vld [vmem:[%s2169_s4 + $0x60] sm:$0xff] }
 0xd58   :  { %v604_v29 = vpop.permute.xlu1 %603 }
 0xd59   :  { %v606_v30 = vmul.f32 %v604_v29, %v1921_v13 }
 0xd5b   :  { %v607_v32 = vadd.f32 %v1929_v17, %v606_v30 }
 0xdbc   :  { %v616_v28 = vpop.permute.xlu0 %615 }
 0xdbd   :  { %1579 = vmatmul.mubr.msk.f32.vlgmr.msra.gmra.mrb[6].mxu1 %vm55_vm1, %v616_v28 }
 0xdbe   :  { %1683 = vmatpush3.bf16.msra.mxu1 %v1901_v5  ;;  %1592 = vmatprep.mubr.msk.f32.mxu1 %vm1832_vm0, %v1833_v3 }
 0xdbf   :  { %1687 = vmatprep.subr.bf16.mxu1 %v1831_v0 }
 0xdcd   :  { %v610_v31 = vpop.permute.xlu0 %609 }
 0xdce   :  { %v612_v33 = vmul.f32 %v610_v31, %v1924_v16 }
 0xdd0   :  { %v613_v34 = vadd.f32 %v612_v33, %v607_v32 }
 0xe90   :  { %v685_v35 = vpop.f32.mrb[6].mxu1 }
 0xe91   :  { %v689_v36 = vadd.f32 %v685_v35, %v613_v34  ;;  %v1580_v37 = vpop.f32.mrb[7].mxu1 }
 0xe92   :  { %v939_v37 = vld [vmem:[%s2169_s4 + $0x28] sm:$0xff] }
 0xe93   :  { %1801 = vtanh.f32 %v689_v36  ;;  %v1463_v5 = vmul.f32 -1.442695, %v689_v36  ;;  %v938_v36 = vld [vmem:[%s2169_s4 + $0x20] sm:$0xff] }
 0xe95   :  { %1803 = vpow2.f32 %v1463_v5 }
 0xe9d   :  { %v1802_v38 = vpop.eup %1801 }
 0xe9e   :  { %699 = vrot.lane.b32.xlu1 %v1802_v38, %s1836_s27  ;;  %v1685_v38 = vpack.c.bf16 %v939_v37, %v938_v36 }
 0xe9f   :  { %v1804_v39 = vpop.eup %1803 }
 0xea0   :  { %v693_v40 = vadd.f32 1.0, %v1804_v39  ;;  %v23_v39 = vld [vmem:[%s2171_s1] sm:$0x3] }
 0xea2   :  { %1805 = vrcp.f32 %v693_v40 }
 0xeac   :  { %v1806_v41 = vpop.eup %1805 }
 0xead   :  { %v697_v44 = vmul.f32 %v1806_v41, %v595_v22 }
 0xf10   :  { %v700_v42 = vpop.permute.xlu1 %699 }
 0xf11   :  { %v702_v43 = vmul.f32 %v1806_v41, %v700_v42  ;;  %v24_v42 = vld [vmem:[%s2172_s2] sm:$0x3]  ;;  %s1854_s2 = smov 1  }
 0xf13   :  { %704 = vrot.lane.b32.xlu1 %v702_v43, %s1837_s28 }
 0xf85   :  { %v705_v45 = vpop.permute.xlu1 %704 }
 0xf86   :  { %v707_v46 = vadd.f32 %v705_v45, %v697_v44  ;;  %v1045_v44 = vld [vmem:[%s2169_s4 + $0x48] sm:$0xff]  ;;  %v1046_v45 = vld [vmem:[%s2169_s4 + $0x50] sm:$0xff] }
 0xf88   :  { %1807 = vtanh.f32 %v707_v46 }
 0xf92   :  { %v1808_v47 = vpop.eup %1807 }
 0xf93   :  { %710 = vrot.lane.b32.xlu0 %v1808_v47, %s1838_s29  ;;  %v1047_v47 = vld [vmem:[%s2169_s4 + $0x58] sm:$0xff] }
 0xf94   :  { %v1691_v49 = vpack.c.bf16 %v1048_v48, %v1047_v47 }
 0xf97   :  { %715 = vperm.xlu0 %1755, %v1899_v4  }
 0xf9b   :  { %1758 = vset.pattern.permute.xlu0 %v1853_v18 }
0x1005   :  { %v711_v50 = vpop.permute.xlu0 %710 }
0x1006   :  { %v713_v51 = vmul.f32 %v1806_v41, %v711_v50  ;;  %v1049_v50 = vld [vmem:[%s2169_s4 + $0x68] sm:$0x3] }
0x1008   :  { %727 = vrot.lane.b32.xlu1 %v713_v51, %s1841_s30  ;;  %v1134_v51 = vld [vmem:[%s2169_s4 + $0x78] sm:$0xff] }
0x100c   :  { %721 = vperm.xlu1 %1756, %v1899_v4  }
0x1010   :  { %1757 = vset.pattern.permute.xlu1 %v1852_v15  ;;  %v10_v15 = vstv %s2173_s3 }
0x1011   :  { %11 = vst [vmem:[#allocation2] sm:$0x1] %v10_v15 }
0x1016   :  { %v716_v53 = vpop.permute.xlu0 %715 }
0x1017   :  { %v718_v54 = vmul.f32 %v716_v53, %v1921_v13  ;;  %v1136_v53 = vld [vmem:[%s2169_s4 + $0x88] sm:$0xff] }
0x1019   :  { %v719_v56 = vadd.f32 %v1929_v17, %v718_v54 }
0x107a   :  { %v728_v52 = vpop.permute.xlu1 %727 }
0x107b   :  { %1586 = vmatmul.mubr.msk.f32.vlgmr.msra.gmra.mrb[4].mxu0 %vm55_vm1, %v728_v52  ;;  %v1135_v52 = vld [vmem:[%s2169_s4 + $0x80] sm:$0xff] }
0x107c   :  { %1599 = vmatprep.mubr.msk.f32.mxu0 %vm1832_vm0, %v1833_v3  ;;  %1686 = vmatpush3.bf16.msra.mxu0 %v1685_v38  ;;  %v1694_v54 = vpack.c.bf16 %v1135_v52, %v1134_v51 }
0x107d   :  { %1693 = vmatprep.subr.bf16.mxu0 %v1831_v0 }
0x108b   :  { %v722_v55 = vpop.permute.xlu1 %721 }
0x108c   :  { %v724_v57 = vmul.f32 %v722_v55, %v1924_v16  ;;  %v1137_v55 = vld [vmem:[%s2169_s4 + $0x90] sm:$0xff] }
0x108e   :  { %v725_v58 = vadd.f32 %v724_v57, %v719_v56  ;;  %v1697_v56 = vpack.c.bf16 %v1137_v55, %v1136_v53  ;;  %v1468_v57 = vld [vmem:[%s2169_s4 + $0x30] ss:$0 sm:$0xff] }
0x114e   :  { %v797_v59 = vpop.f32.mrb[4].mxu0 }
0x114f   :  { %v801_v60 = vadd.f32 %v797_v59, %v725_v58  ;;  %v1587_v61 = vpop.f32.mrb[5].mxu0  ;;  %v1470_v59 = vld [vmem:[%s2169_s4 + $0x38] ss:$0 sm:$0xff] }
0x1151   :  { %1809 = vtanh.f32 %v801_v60  ;;  %v1465_v63 = vmul.f32 -1.442695, %v801_v60 }
0x1153   :  { %1811 = vpow2.f32 %v1465_v63 }
0x115b   :  { %v1810_v62 = vpop.eup %1809 }
0x115c   :  { %811 = vrot.lane.b32.xlu1 %v1810_v62, %s1836_s27 }
0x115d   :  { %v1812_v1 = vpop.eup %1811 }
0x115e   :  { %v805_v2 = vadd.f32 1.0, %v1812_v1 }
0x1160   :  { %1813 = vrcp.f32 %v805_v2 }
0x116a   :  { %v1814_v7 = vpop.eup %1813 }
0x116b   :  { %v809_v10 = vmul.f32 %v1814_v7, %v707_v46  ;;  %v1688_v46 = vpack.c.bf16 %v1046_v45, %v1045_v44 }
0x11ce   :  { %v812_v8 = vpop.permute.xlu1 %811 }
0x11cf   :  { %v814_v9 = vmul.f32 %v1814_v7, %v812_v8 }
0x11d1   :  { %816 = vrot.lane.b32.xlu0 %v814_v9, %s1837_s28 }
0x1243   :  { %v817_v11 = vpop.permute.xlu0 %816 }
0x1244   :  { %v819_v12 = vadd.f32 %v817_v11, %v809_v10  ;;  %v1138_v11 = vld [vmem:[%s2169_s4 + $0x98] sm:$0x3] }
0x1246   :  { %1815 = vtanh.f32 %v819_v12 }
0x1250   :  { %v1816_v14 = vpop.eup %1815 }
0x1251   :  { %822 = vrot.lane.b32.xlu1 %v1816_v14, %s1838_s29  ;;  %v1222_v14 = vld [vmem:[%s2169_s4 + $0xb0] sm:$0xff] }
0x1255   :  { %827 = vperm.xlu1 %1757, %v1899_v4  }
0x1259   :  { %1760 = vset.pattern.permute.xlu1 %v1834_v6 }
0x12c3   :  { %v823_v19 = vpop.permute.xlu1 %822 }
0x12c4   :  { %v825_v20 = vmul.f32 %v1814_v7, %v823_v19  ;;  %v1471_v7 = vld [vmem:[%s2169_s4 + $0x40] ss:$0 sm:$0xff] }
0x12c5   :  { %v1483_v19 = vld [vmem:[#allocation2] ss:$0 sm:$0xff] }
0x12c6   :  { %839 = vrot.lane.b32.xlu0 %v825_v20, %s1841_s30  ;;  %v1472_v20 = vld [vmem:[%s2169_s4 + $0x70] ss:$0 sm:$0xff] }
0x12ca   :  { %833 = vperm.xlu0 %1758, %v1899_v4  }
0x12ce   :  { %1759 = vset.pattern.permute.xlu0 %v1834_v6 }
0x12d4   :  { %v828_v22 = vpop.permute.xlu1 %827 }
0x12d5   :  { %v830_v23 = vmul.f32 %v828_v22, %v1921_v13  ;;  %v1308_v22 = vld [vmem:[%s2169_s4 + $0xe0] sm:$0xff] }
0x12d7   :  { %v831_v25 = vadd.f32 %v1929_v17, %v830_v23 }
0x1338   :  { %v840_v21 = vpop.permute.xlu0 %839 }
0x1339   :  { %1593 = vmatmul.mubr.msk.f32.vlgmr.msra.gmra.mrb[8].mxu1 %vm55_vm1, %v840_v21  ;;  %v1307_v21 = vld [vmem:[%s2169_s4 + $0xd8] sm:$0xff] }
0x133a   :  { %1612 = vmatprep.mubr.msk.f32.mxu1 %vm1832_vm0, %v1833_v3  ;;  %1689 = vmatpush3.bf16.msra.mxu1 %v1688_v46 }
0x133b   :  { %1690 = vmatprep.subr.bf16.mxu1 %v1831_v0 }
0x133e   :  { %1692 = vmatpush3.bf16.msra.mxu1 %v1691_v49 }
0x133f   :  { %1610 = vmatprep.subr.mxu1 %v1833_v3 }
0x1342   :  { %1611 = vmatpush3.msk.msra.mxu1 %vm1059_vm2, %v1049_v50 }
0x1343   :  { %1699 = vmatprep.subr.bf16.mxu1 %v1831_v0 }
0x1349   :  { %v834_v24 = vpop.permute.xlu0 %833 }
0x134a   :  { %v836_v26 = vmul.f32 %v834_v24, %v1924_v16 }
0x134c   :  { %v837_v27 = vadd.f32 %v836_v26, %v831_v25  ;;  %v1706_v26 = vpack.c.bf16 %v1308_v22, %v1307_v21 }
0x140c   :  { %v909_v28 = vpop.f32.mrb[8].mxu1 }
0x140d   :  { %v913_v29 = vadd.f32 %v909_v28, %v837_v27  ;;  %v1594_v4 = vpop.f32.mrb[9].mxu1  ;;  %v1309_v28 = vld [vmem:[%s2169_s4 + $0xe8] sm:$0xff] }
0x140f   :  { %1817 = vtanh.f32 %v913_v29  ;;  %v1467_v30 = vmul.f32 -1.442695, %v913_v29  ;;  %v1310_v29 = vld [vmem:[%s2169_s4 + $0xf0] sm:$0xff] }
0x1410   :  { %v1709_v4 = vpack.c.bf16 %v1310_v29, %v1309_v28 }
0x1411   :  { %1819 = vpow2.f32 %v1467_v30  ;;  %v1312_v30 = vld [vmem:[%s2169_s4 + $0x100] sm:$0xff] }
0x1419   :  { %v1818_v6 = vpop.eup %1817 }
0x141a   :  { %923 = vrot.lane.b32.xlu1 %v1818_v6, %s1836_s27  ;;  %v1311_v6 = vld [vmem:[%s2169_s4 + $0xf8] sm:$0xff] }
0x141b   :  { %v1820_v31 = vpop.eup %1819 }
0x141c   :  { %v917_v32 = vadd.f32 1.0, %v1820_v31  ;;  %v1712_v31 = vpack.c.bf16 %v1312_v30, %v1311_v6 }
0x141e   :  { %1821 = vrcp.f32 %v917_v32  ;;  %v1313_v32 = vld [vmem:[%s2169_s4 + $0x108] sm:$0xff] }
0x1428   :  { %v1822_v33 = vpop.eup %1821 }
0x1429   :  { %v921_v17 = vmul.f32 %v1822_v33, %v819_v12  ;;  %v1221_v12 = vld [vmem:[%s2169_s4 + $0xa8] sm:$0xff] }
0x142a   :  { %v1700_v18 = vpack.c.bf16 %v1222_v14, %v1221_v12 }
0x148c   :  { %v924_v13 = vpop.permute.xlu1 %923 }
0x148d   :  { %v926_v34 = vmul.f32 %v1822_v33, %v924_v13 }
0x148f   :  { %928 = vrot.lane.b32.xlu1 %v926_v34, %s1837_s28  ;;  %v1223_v34 = vld [vmem:[%s2169_s4 + $0xb8] sm:$0xff] }
0x1501   :  { %v929_v16 = vpop.permute.xlu1 %928 }
0x1502   :  { %v931_v35 = vadd.f32 %v929_v16, %v921_v17  ;;  %v1224_v17 = vld [vmem:[%s2169_s4 + $0xc0] sm:$0xff] }
0x1503   :  { %v1703_v16 = vpack.c.bf16 %v1224_v17, %v1223_v34 }
0x1504   :  { %1823 = vtanh.f32 %v931_v35  ;;  %v1225_v35 = vld [vmem:[%s2169_s4 + $0xc8] sm:$0x3] }
0x150e   :  { %v1824_v5 = vpop.eup %1823 }
0x150f   :  { %934 = vrot.lane.b32.xlu0 %v1824_v5, %s1838_s29 }
0x1513   :  { %943 = vperm.xlu0 %1759, %v23_v39  }
0x1581   :  { %v935_v40 = vpop.permute.xlu0 %934 }
0x1582   :  { %v937_v41 = vmul.f32 %v1822_v33, %v935_v40  ;;  %v1314_v33 = vld [vmem:[%s2169_s4 + $0x110] sm:$0xff] }
0x1583   :  { %v1715_v13 = vpack.c.bf16 %v1314_v33, %v1313_v32 }
0x1584   :  { %952 = vrot.lane.b32.xlu1 %v937_v41, %s1841_s30 }
0x1588   :  { %1029 = vperm.xlu1 %1760, %v24_v42  }
0x158c   :  { %1417 = vrot.lane.b32.xlu1 %v1483_v19, %s1854_s2 }
0x1592   :  { %v944_v58 = vpop.permute.xlu0 %943 }
0x1593   :  { %v950_v61 = vmul.f32 %v1468_v57, %v944_v58 }
0x15f6   :  { %v953_v43 = vpop.permute.xlu1 %952 }
0x15f7   :  { %1600 = vmatmul.mubr.msk.f32.vlgmr.msra.gmra.mrb[6].mxu0 %vm55_vm1, %v953_v43 }
0x15f8   :  { %1625 = vmatprep.mubr.msk.f32.mxu0 %vm1832_vm0, %v1833_v3  ;;  %1695 = vmatpush3.bf16.msra.mxu0 %v1694_v54 }
0x15f9   :  { %1696 = vmatprep.subr.bf16.mxu0 %v1831_v0 }
0x15fc   :  { %1698 = vmatpush3.bf16.msra.mxu0 %v1697_v56 }
0x15fd   :  { %1623 = vmatprep.subr.mxu0 %v1833_v3 }
0x1600   :  { %1624 = vmatpush3.msk.msra.mxu0 %vm1059_vm2, %v1138_v11 }
0x1601   :  { %1705 = vmatprep.subr.bf16.mxu0 %v1831_v0 }
0x1607   :  { %v1030_v60 = vpop.permute.xlu1 %1029 }
0x1608   :  { %v1036_v62 = vmul.f32 %v1470_v59, %v1030_v60 }
0x160b   :  { %v1418_v56 = vpop.permute.xlu1 %1417 }
0x16ca   :  { %v1022_v63 = vpop.f32.mrb[6].mxu0 }
0x16cb   :  { %v1023_v1 = vadd.f32 %v1022_v63, %v950_v61  ;;  %v1601_v2 = vpop.f32.mrb[7].mxu0 }
0x16cc   :  { %v1478_v2 = vld [vmem:[%s2169_s4 + $0xd0] ss:$0 sm:$0xff] }
0x16cd   :  { %v1037_v8 = vadd.f32 %v1036_v62, %v1023_v1 }
0x16cf   :  { %v1043_v9 = vadd.f32 %v1471_v7, %v1037_v8 }
0x16d1   :  { %v1044_v10 = vmax.f32 %v1043_v9, 0.0 }
0x16d3   :  { %1613 = vmatmul.mubr.msk.f32.vlgmr.msra.gmra.mrb[10].mxu1 %vm1055_vm3, %v1044_v10 }
0x16d4   :  { %1638 = vmatprep.mubr.msk.f32.mxu1 %vm1832_vm0, %v1833_v3  ;;  %1701 = vmatpush3.bf16.msra.mxu1 %v1700_v18 }
0x16d5   :  { %1702 = vmatprep.subr.bf16.mxu1 %v1831_v0 }
0x16d8   :  { %1704 = vmatpush3.bf16.msra.mxu1 %v1703_v16 }
0x16d9   :  { %1636 = vmatprep.subr.mxu1 %v1833_v3 }
0x16dc   :  { %1637 = vmatpush3.msk.msra.mxu1 %vm1059_vm2, %v1225_v35 }
0x17a6   :  { %v1129_v23 = vpop.f32.mrb[10].mxu1 }
0x17a7   :  { %v1130_v24 = vadd.f32 %v1472_v20, %v1129_v23  ;;  %v1614_v25 = vpop.f32.mrb[11].mxu1 }
0x17a9   :  { %v1133_v27 = vmax.f32 %v1130_v24, 0.0 }
0x17ab   :  { %1626 = vmatmul.mubr.msk.f32.vlgmr.msra.gmra.mrb[8].mxu0 %vm1055_vm3, %v1133_v27 }
0x17ac   :  { %1707 = vmatpush3.bf16.msra.mxu0 %v1706_v26  ;;  %1657 = vmatprep.mubr.msk.f32.mxu0 %vm1832_vm0, %v1833_v3  ;;  %v1481_v3 = vld [vmem:[%s2169_s4 + $0x118] ss:$0 sm:$0xff] }
0x17ad   :  { %1708 = vmatprep.subr.bf16.mxu0 %v1831_v0 }
0x17b0   :  { %1710 = vmatpush3.bf16.msra.mxu0 %v1709_v4 }
0x17b1   :  { %1711 = vmatprep.subr.bf16.mxu0 %v1831_v0 }
0x17b4   :  { %1713 = vmatpush3.bf16.msra.mxu0 %v1712_v31 }
0x17b5   :  { %1714 = vmatprep.subr.bf16.mxu0 %v1831_v0  ;;  %v1475_v0 = vld [vmem:[%s2169_s4 + $0xa0] ss:$0 sm:$0xff] }
0x17b8   :  { %1716 = vmatpush3.bf16.msra.mxu0 %v1715_v13 }
0x17bb   :  { %1658 = vmatmul.mubr.msk.f32.vlgmr.msra.gmra.mrb[10].mxu0 %vm1320_vm4, %v1044_v10 }
0x187e   :  { %v1216_v36 = vpop.f32.mrb[8].mxu0 }
0x187f   :  { %v1217_v37 = vadd.f32 %v1475_v0, %v1216_v36  ;;  %v1627_v38 = vpop.f32.mrb[9].mxu0 }
0x1881   :  { %v1220_v5 = vmax.f32 %v1217_v37, 0.0 }
0x1883   :  { %1639 = vmatmul.mubr.msk.f32.vlgmr.msra.gmra.mrb[12].mxu1 %vm1055_vm3, %v1220_v5 }
0x188e   :  { %v1389_v39 = vpop.f32.mrb[10].mxu0 }
0x188f   :  { %v1390_v40 = vadd.f32 %v1481_v3, %v1389_v39  ;;  %v1659_v41 = vpop.f32.mrb[11].mxu0 }
0x1891   :  { %1825 = vtanh.f32 %v1390_v40  ;;  %v1397_v42 = vand.u32 2147483647, %v1390_v40  ;;  %v1394_v54 = vmax.f32 %v1390_v40, 0.0  ;;  %vm1395_vm6 = vcmp.ne.f32.partialorder %v1390_v40, %v1390_v40 }
0x1893   :  { %v1398_v43 = vsub.f32 0.0, %v1397_v42 }
0x1895   :  { %v1399_v44 = vmul.f32 1.442695, %v1398_v43 }
0x1897   :  { %1827 = vpow2.f32 %v1399_v44 }
0x189b   :  { %v1826_v45 = vpop.eup %1825 }
0x189c   :  { %1429 = vrot.lane.b32.xlu1 %v1826_v45, %s1854_s2 }
0x18a1   :  { %v1828_v46 = vpop.eup %1827 }
0x18a2   :  { %v1401_v47 = vadd.f32 1.0, %v1828_v46  ;;  %v1404_v48 = vmul.f32 -0.5, %v1828_v46  ;;  %v1407_v50 = vand.u32 2147483647, %v1828_v46 }
0x18a4   :  { %1829 = vlog2.f32 %v1401_v47  ;;  %v1405_v49 = vadd.f32 1.0, %v1404_v48  ;;  %vm1408_vm5 = vcmp.lt.f32.partialorder %v1407_v50, 0.0004427343 }
0x18a6   :  { %v1406_v53 = vmul.f32 %v1828_v46, %v1405_v49 }
0x18ae   :  { %v1830_v51 = vpop.eup %1829 }
0x18af   :  { %v1403_v52 = vmul.f32 0.6931472, %v1830_v51 }
0x18b1   :  { %v1409_v55 = vsel %vm1408_vm5, %v1406_v53, %v1403_v52 }
0x18b2   :  { %v1410_v57 = vadd.f32 %v1409_v55, %v1394_v54 }
0x18b4   :  { %v1411_v58 = vsel %vm1395_vm6, %v1390_v40, %v1410_v57 }
0x18b5   :  { %v1420_v59 = vmul.f32 %v1418_v56, %v1411_v58 }
0x18b7   :  { %1422 = vrot.lane.b32.xlu0 %v1420_v59, %s1855_s17 }
0x18bb   :  { %1433 = vrot.lane.b32.xlu0 %v1411_v58, %s1854_s2 }
0x190e   :  { %v1430_v8 = vpop.permute.xlu1 %1429 }
0x1929   :  { %v1423_v60 = vpop.permute.xlu0 %1422 }
0x192a   :  { %v1425_v61 = vadd.f32 %v1826_v45, %v1423_v60 }
0x192c   :  { %v1484_v62 = vclamps-f32 %v1425_v61, 1.0 }
0x192d   :  { %v1434_v10 = vpop.permute.xlu0 %1433 }
0x192e   :  { %1437 = vrot.lane.b32.xlu1 %v1484_v62, %s1856_s18 }
0x1956   :  { %v1303_v63 = vpop.f32.mrb[12].mxu1 }
0x1957   :  { %v1640_v1 = vpop.f32.mrb[13].mxu1  ;;  %v1304_v7 = vadd.f32 %v1478_v2, %v1303_v63 }
0x1959   :  { %v1441_v9 = vsel %vm1440_vm7, %v1304_v7, %v1430_v8 }
0x195a   :  { %v1443_v12 = vsel %vm1442_vm8, %v1441_v9, %v1434_v10 }
0x19a0   :  { %v1438_v11 = vpop.permute.xlu1 %1437 }
0x19a1   :  { %v1445_v14 = vsel %vm1444_vm9, %v1443_v12, %v1438_v11 }
0x19a2   :  { %1447 = vst.msk [vmem:[%s2174_s5] sm:$0x3] %vm1446_vm10, %v1445_v14 }

</bundles_post_ra>
